<compile_context>
chip_gen: v5e
topology: v5e:2x2
jax: 0.10.0
libtpu: 0.0.40
codegen_flags: <defaults>
</compile_context>

<pallas_src>
import jax
import jax.numpy as jnp
from jax import lax
from jax.experimental import pallas as pl
from jax.experimental.pallas import tpu as pltpu


def _vmem():
    return pl.BlockSpec(memory_space=pltpu.MemorySpace.VMEM)


def _smem():
    return pl.BlockSpec(memory_space=pltpu.MemorySpace.SMEM)


# ----------------------------------------------------------------------------
# Fused per-layer kernel: length-aware BiLSTM + AdaLayerNorm + style concat
#                         + pad masking, time-major throughout.
# ----------------------------------------------------------------------------
def _duration_layer_kernel(maxlen_ref, len_ref, x_ref, style_ref,
                           w_ih_ref, w_hh_ref, b_ref,
                           wg_ref, wb_ref, bg_ref, bb_ref,
                           out_ref,
                           xpf_ref, xpb_ref, outf_ref, outb_ref):
    """maxlen_ref: [1] int32 (SMEM)   max valid length -> recurrence trip count
       len_ref:    [B, 1] int32       per-sequence valid lengths
       x_ref:      [T*B, I] f32       flattened time-major layer input
       style_ref:  [B, S] f32
       w_ih_ref:   [2, I, 4H] bf16    fused-gate input weights  (dir, in, i|f|g|o)
       w_hh_ref:   [2, H, 4H] bf16    fused-gate hidden weights
       b_ref:      [2, 1, 4H] f32     b_ih + b_hh
       wg/wb:      [S, D] bf16, bg/bb: [1, D] f32   AdaLayerNorm style proj (D = 2H)
       out_ref:    [T, B, D + S] f32  masked( concat((1+g)*LN(lstm)+b, style) )
       scratches:  xpf/xpb [T, B, 4H] bf16   hoisted input projections
                   outf/outb [T, B, H] f32   per-direction hidden states"""
    H = w_hh_ref.shape[1]
    T, B, _ = outf_ref.shape
    S = style_ref.shape[-1]
    D = 2 * H

    lens = len_ref[...]                       # [B, 1] int32
    n_steps = maxlen_ref[0]                   # scalar int32 == max(text_lengths)

    # ---- hoisted input projection: one large bf16 MXU matmul per direction --
    x_bf = x_ref[...].astype(jnp.bfloat16)                             # [T*B, I]
    proj_f = jnp.dot(x_bf, w_ih_ref[0],
                     preferred_element_type=jnp.float32) + b_ref[0]    # [T*B, 4H]
    xpf_ref[...] = proj_f.reshape(T, B, 4 * H).astype(jnp.bfloat16)
    proj_b = jnp.dot(x_bf, w_ih_ref[1],
                     preferred_element_type=jnp.float32) + b_ref[1]
    xpb_ref[...] = proj_b.reshape(T, B, 4 * H).astype(jnp.bfloat16)

    # ---- zero only the tail (t >= max_len); in-loop writes cover t < max_len
    def _zero_tail(t, c):
        outf_ref[t] = jnp.zeros((B, H), jnp.float32)
        outb_ref[t] = jnp.zeros((B, H), jnp.float32)
        return c
    lax.fori_loop(n_steps, T, _zero_tail, 0)

    # ---- bidirectional recurrence, fwd & bwd interleaved in one loop --------
    def lstm_cell(gates, c_prev):
        i_g = jax.nn.sigmoid(gates[:, 0 * H:1 * H])
        f_g = jax.nn.sigmoid(gates[:, 1 * H:2 * H])
        g_g = jnp.tanh(gates[:, 2 * H:3 * H])
        o_g = jax.nn.sigmoid(gates[:, 3 * H:4 * H])
        c_new = f_g * c_prev + i_g * g_g
        h_new = o_g * jnp.tanh(c_new)
        return h_new, c_new

    def step(s, carry):
        h_f, c_f, h_b, c_b = carry
        t_f = s
        t_b = n_steps - 1 - s
        xg_f = xpf_ref[t_f].astype(jnp.float32)                        # [B, 4H]
        xg_b = xpb_ref[t_b].astype(jnp.float32)
        # bf16 MXU dot, f32 accumulation; weights stream from VMEM each step
        g_f = xg_f + jnp.dot(h_f.astype(jnp.bfloat16), w_hh_ref[0],
                             preferred_element_type=jnp.float32)
        g_b = xg_b + jnp.dot(h_b.astype(jnp.bfloat16), w_hh_ref[1],
                             preferred_element_type=jnp.float32)
        hf_new, cf_new = lstm_cell(g_f, c_f)
        hb_new, cb_new = lstm_cell(g_b, c_b)
        valid_f = t_f < lens                                           # [B, 1]
        valid_b = t_b < lens
        # pack/pad_packed_sequence: zero padded outputs, freeze padded states
        outf_ref[t_f] = jnp.where(valid_f, hf_new, 0.0)
        outb_ref[t_b] = jnp.where(valid_b, hb_new, 0.0)
        h_f = jnp.where(valid_f, hf_new, h_f)
        c_f = jnp.where(valid_f, cf_new, c_f)
        h_b = jnp.where(valid_b, hb_new, h_b)
        c_b = jnp.where(valid_b, cb_new, c_b)
        return h_f, c_f, h_b, c_b

    z = jnp.zeros((B, H), jnp.float32)
    lax.fori_loop(0, n_steps, step, (z, z, z, z))

    # ---- AdaLayerNorm: (1+gamma)*LN(x) + beta, style concat + mask ----------
    # No concatenations: LN stats from the two half-buffers, direct slab stores.
    s_f32 = style_ref[...]                                             # [B, S]
    s_bf = s_f32.astype(jnp.bfloat16)
    gamma = jnp.dot(s_bf, wg_ref[...],
                    preferred_element_type=jnp.float32) + bg_ref[...]  # [B, D]
    beta = jnp.dot(s_bf, wb_ref[...],
                   preferred_element_type=jnp.float32) + bb_ref[...]
    g1_f = 1.0 + gamma[:, :H]
    g1_b = 1.0 + gamma[:, H:]
    bt_f = beta[:, :H]
    bt_b = beta[:, H:]
    inv_D = 1.0 / D

    TC_CHUNK = 64
    for t0 in range(0, T, TC_CHUNK):
        tc = min(TC_CHUNK, T - t0)
        f = outf_ref[t0:t0 + tc]                                       # [tc,B,H]
        bw = outb_ref[t0:t0 + tc]
        mean = (jnp.sum(f, axis=-1, keepdims=True)
                + jnp.sum(bw, axis=-1, keepdims=True)) * inv_D
        df = f - mean
        db = bw - mean
        var = (jnp.sum(df * df, axis=-1, keepdims=True)
               + jnp.sum(db * db, axis=-1, keepdims=True)) * inv_D
        inv = lax.rsqrt(var + 1e-5)
        y_f = g1_f[None, :, :] * (df * inv) + bt_f[None, :, :]
        y_b = g1_b[None, :, :] * (db * inv) + bt_b[None, :, :]
        keep = (lax.broadcasted_iota(jnp.int32, (tc, B, 1), 0) + t0) \
            < lens[None, :, :]
        out_ref[t0:t0 + tc, :, :H] = jnp.where(keep, y_f, 0.0)
        out_ref[t0:t0 + tc, :, H:D] = jnp.where(keep, y_b, 0.0)
        out_ref[t0:t0 + tc, :, D:] = jnp.where(keep, s_f32[None, :, :], 0.0)


def _duration_layer(x_flat, style, lens_b1, max_len, p, *, T, B):
    H = p["w_hh"].shape[1]
    D = 2 * H
    S = style.shape[-1]
    I = x_flat.shape[-1]

    # explicit scoped-VMEM budget (inputs + output + scratches, with headroom)
    bytes_est = (
        T * B * I * 4                      # x
        + B * 4 + B * S * 4                # lens, style
        + 2 * I * 4 * H * 2                # w_ih (bf16)
        + 2 * H * 4 * H * 2                # w_hh (bf16)
        + 2 * 4 * H * 4                    # fused bias
        + 2 * S * D * 2 + 2 * D * 4        # wg, wb, bg, bb
        + T * B * (D + S) * 4              # out
        + 2 * T * B * 4 * H * 2            # xp scratches (bf16)
        + 2 * T * B * H * 4                # per-direction hidden scratches
    )
    vmem_limit = int(min(max(4 * bytes_est, 16 << 20), 64 << 20))

    return pl.pallas_call(
        _duration_layer_kernel,
        out_shape=jax.ShapeDtypeStruct((T, B, D + S), jnp.float32),
        in_specs=[_smem(),                       # max_len (scalar)
                  _vmem(), _vmem(), _vmem(),     # lens, x_flat, style
                  _vmem(), _vmem(), _vmem(),     # w_ih, w_hh, b
                  _vmem(), _vmem(), _vmem(), _vmem()],  # wg, wb, bg, bb
        out_specs=_vmem(),
        scratch_shapes=[
            pltpu.VMEM((T, B, 4 * H), jnp.bfloat16),   # fwd input projection
            pltpu.VMEM((T, B, 4 * H), jnp.bfloat16),   # bwd input projection
            pltpu.VMEM((T, B, H), jnp.float32),        # fwd hidden states
            pltpu.VMEM((T, B, H), jnp.float32),        # bwd hidden states
        ],
        compiler_params=pltpu.CompilerParams(vmem_limit_bytes=vmem_limit),
    )(max_len, lens_b1, x_flat, style, p["w_ih"], p["w_hh"], p["b"],
      p["wg"], p["wb"], p["bg"], p["bb"])


# ----------------------------------------------------------------------------
# Parameter init (deterministic, PyTorch-default-style uniform ranges),
# repacked into the fused-gate / bf16 layouts the kernel expects.
# ----------------------------------------------------------------------------
def init_duration_encoder_params(key, sty_dim, d_model, nlayers):
    H = d_model // 2
    I = d_model + sty_dim
    k_lstm = 1.0 / (H ** 0.5)
    k_fc = 1.0 / (sty_dim ** 0.5)
    params = []
    for _ in range(nlayers):
        key, k0, k1, k2, k3, k4, k5 = jax.random.split(key, 7)
        # PyTorch LSTM param shapes (per direction): [4H, I], [4H, H], [4H], [4H]
        w_ih = jax.random.uniform(k0, (2, 4 * H, I), jnp.float32, -k_lstm, k_lstm)
        w_hh = jax.random.uniform(k1, (2, 4 * H, H), jnp.float32, -k_lstm, k_lstm)
        b_ih = jax.random.uniform(k2, (2, 4 * H), jnp.float32, -k_lstm, k_lstm)
        b_hh = jax.random.uniform(k3, (2, 4 * H), jnp.float32, -k_lstm, k_lstm)
        # AdaLayerNorm.fc = Linear(sty_dim, 2*d_model): weight [2D, S], bias [2D]
        fc_w = jax.random.uniform(k4, (2 * d_model, sty_dim), jnp.float32, -k_fc, k_fc)
        fc_b = jax.random.uniform(k5, (2 * d_model,), jnp.float32, -k_fc, k_fc)
        params.append(dict(
            # bf16 MXU-feed layouts (f32 kept for biases / statistics)
            w_ih=jnp.transpose(w_ih, (0, 2, 1)).astype(jnp.bfloat16),  # [2, I, 4H]
            w_hh=jnp.transpose(w_hh, (0, 2, 1)).astype(jnp.bfloat16),  # [2, H, 4H]
            b=(b_ih + b_hh).reshape(2, 1, 4 * H),                      # [2, 1, 4H] f32
            wg=fc_w[:d_model].T.astype(jnp.bfloat16),                  # [S, D]
            wb=fc_w[d_model:].T.astype(jnp.bfloat16),                  # [S, D]
            bg=fc_b[:d_model].reshape(1, d_model),
            bb=fc_b[d_model:].reshape(1, d_model),
        ))
    return params


# ----------------------------------------------------------------------------
# Forward pass (one-time relayout + batch padding + cheap flattens in plain
# JAX; each layer is a single fused Pallas kernel, activations stay
# time-major end-to-end).
# ----------------------------------------------------------------------------
def duration_encoder_forward(params, x, style, text_lengths, m):
    """x: [B, d_model, T] (NCW), style: [B, sty_dim],
       text_lengths: [B] int32, m: [B, T] bool pad mask (True = padded).
       Returns [B, T, d_model + sty_dim] (== the PyTorch module's return)."""
    B, d_model, T = x.shape
    S = style.shape[-1]
    style = style.astype(jnp.float32)
    text_lengths = text_lengths.astype(jnp.int32)

    # pad batch to a multiple of 8 so per-step tensors are full-sublane
    Bp = ((B + 7) // 8) * 8
    pad = Bp - B
    if pad:
        x = jnp.pad(x, ((0, pad), (0, 0), (0, 0)))
        style = jnp.pad(style, ((0, pad), (0, 0)))
        text_lengths = jnp.pad(text_lengths, (0, pad))          # length 0
        m = jnp.pad(m, ((0, pad), (0, 0)), constant_values=True)

    # one-time relayout to time-major + style concat + pad mask
    # (matches x.permute(2,0,1); cat(style); masked_fill in the reference)
    x_tbc = jnp.transpose(x, (2, 0, 1)).astype(jnp.float32)          # [T, Bp, C]
    s_tbc = jnp.broadcast_to(style[None, :, :], (T, Bp, S))
    keep = jnp.logical_not(m).T[:, :, None]                          # [T, Bp, 1]
    h = jnp.where(keep, jnp.concatenate([x_tbc, s_tbc], axis=-1), 0.0)

    lens_b1 = text_lengths.reshape(Bp, 1)
    max_len = jnp.max(text_lengths).astype(jnp.int32).reshape(1)

    for p in params:
        # TODO(synk): F.dropout omitted (eval-mode identity; training-mode
        # stochastic dropout has no deterministic equivalent here).
        h = _duration_layer(h.reshape(T * Bp, -1), style, lens_b1, max_len,
                            p, T=T, B=Bp)                            # [T, Bp, D+S]

    return jnp.transpose(h, (1, 0, 2))[:B]                           # [B, T, D+S]


if __name__ == "__main__":
    B, T = 2, 8
    d_model, sty_dim, nlayers = 32, 16, 2

    key = jax.random.PRNGKey(0)
    kx, ks, kp = jax.random.split(key, 3)
    x = jax.random.normal(kx, (B, d_model, T), jnp.float32)
    style = jax.random.normal(ks, (B, sty_dim), jnp.float32)
    text_lengths = jnp.array([T, 5], dtype=jnp.int32)
    # m = length_to_mask(text_lengths): True at padded positions
    m = (jnp.arange(T)[None, :] + 1) > text_lengths[:, None]

    params = init_duration_encoder_params(kp, sty_dim, d_model, nlayers)
    out = jax.jit(duration_encoder_forward)(params, x, style, text_lengths, m)
    out = jax.block_until_ready(out)

    assert out.shape == (B, T, d_model + sty_dim), out.shape
    assert bool(jnp.all(jnp.isfinite(out)))
    # padded positions must be exactly zero (mask semantics)
    assert bool(jnp.all(jnp.where(m[..., None], out, 0.0) == 0.0))
    print("KERNEL_OK")
</pallas_src>

<mosaic_0001>
module attributes {stable_mosaic.version = 11 : i64} {
  func.func @_duration_layer_kernel(%arg0: memref<1xi32, #tpu.memory_space<smem>>, %arg1: memref<8x1xi32, #tpu.memory_space<vmem>>, %arg2: memref<64x48xf32, #tpu.memory_space<vmem>>, %arg3: memref<8x16xf32, #tpu.memory_space<vmem>>, %arg4: memref<2x48x64xbf16, #tpu.memory_space<vmem>>, %arg5: memref<2x16x64xbf16, #tpu.memory_space<vmem>>, %arg6: memref<2x1x64xf32, #tpu.memory_space<vmem>>, %arg7: memref<16x32xbf16, #tpu.memory_space<vmem>>, %arg8: memref<16x32xbf16, #tpu.memory_space<vmem>>, %arg9: memref<1x32xf32, #tpu.memory_space<vmem>>, %arg10: memref<1x32xf32, #tpu.memory_space<vmem>>, %arg11: memref<8x8x48xf32, #tpu.memory_space<vmem>>, %arg12: memref<8x8x64xbf16, #tpu.memory_space<vmem>>, %arg13: memref<8x8x64xbf16, #tpu.memory_space<vmem>>, %arg14: memref<8x8x16xf32, #tpu.memory_space<vmem>>, %arg15: memref<8x8x16xf32, #tpu.memory_space<vmem>>) attributes {dimension_semantics = [], scalar_prefetch = 0 : i64, scratch_operands = 4 : i64, tpu.core_type = #tpu.core_type<tc>} {
    %c0 = arith.constant 0 : index
    %c0_0 = arith.constant 0 : index
    %0 = vector.load %arg1[%c0, %c0_0] : memref<8x1xi32, #tpu.memory_space<vmem>>, vector<8x1xi32>
    %c0_1 = arith.constant 0 : index
    %1 = memref.load %arg0[%c0_1] : memref<1xi32, #tpu.memory_space<smem>>
    %c0_2 = arith.constant 0 : index
    %c0_3 = arith.constant 0 : index
    %2 = vector.load %arg2[%c0_2, %c0_3] : memref<64x48xf32, #tpu.memory_space<vmem>>, vector<64x48xf32>
    %3 = arith.truncf %2 : vector<64x48xf32> to vector<64x48xbf16>
    %c0_4 = arith.constant 0 : index
    %c0_5 = arith.constant 0 : index
    %c0_6 = arith.constant 0 : index
    %4 = vector.load %arg4[%c0_4, %c0_5, %c0_6] : memref<2x48x64xbf16, #tpu.memory_space<vmem>>, vector<1x48x64xbf16>
    %5 = vector.shape_cast %4 : vector<1x48x64xbf16> to vector<48x64xbf16>
    %cst = arith.constant dense<0.000000e+00> : vector<64x64xf32>
    %6 = tpu.matmul %3, %5, %cst {dimension_numbers = #tpu.dot_dimension_numbers<[1], [0], [0], [1], [0, 0, 1, 1], [], []>} : vector<64x48xbf16>, vector<48x64xbf16>, vector<64x64xf32> -> vector<64x64xf32>
    %c0_7 = arith.constant 0 : index
    %c0_8 = arith.constant 0 : index
    %c0_9 = arith.constant 0 : index
    %7 = vector.load %arg6[%c0_7, %c0_8, %c0_9] : memref<2x1x64xf32, #tpu.memory_space<vmem>>, vector<1x1x64xf32>
    %8 = vector.shape_cast %7 : vector<1x1x64xf32> to vector<1x64xf32>
    %9 = vector.broadcast %8 : vector<1x64xf32> to vector<64x64xf32>
    %10 = arith.addf %6, %9 : vector<64x64xf32>
    %11 = vector.shape_cast %10 : vector<64x64xf32> to vector<8x8x64xf32>
    %12 = arith.truncf %11 : vector<8x8x64xf32> to vector<8x8x64xbf16>
    %c0_10 = arith.constant 0 : index
    %c0_11 = arith.constant 0 : index
    %c0_12 = arith.constant 0 : index
    %13 = vector.load %arg12[%c0_10, %c0_11, %c0_12] : memref<8x8x64xbf16, #tpu.memory_space<vmem>>, vector<8x8x64xbf16>
    tpu.vector_store %arg12[%c0_10, %c0_11, %c0_12], %12 {strides = array<i32>} : memref<8x8x64xbf16, #tpu.memory_space<vmem>>, vector<8x8x64xbf16>,
    %c1 = arith.constant 1 : index
    %c0_13 = arith.constant 0 : index
    %c0_14 = arith.constant 0 : index
    %14 = vector.load %arg4[%c1, %c0_13, %c0_14] : memref<2x48x64xbf16, #tpu.memory_space<vmem>>, vector<1x48x64xbf16>
    %15 = vector.shape_cast %14 : vector<1x48x64xbf16> to vector<48x64xbf16>
    %cst_15 = arith.constant dense<0.000000e+00> : vector<64x64xf32>
    %16 = tpu.matmul %3, %15, %cst_15 {dimension_numbers = #tpu.dot_dimension_numbers<[1], [0], [0], [1], [0, 0, 1, 1], [], []>} : vector<64x48xbf16>, vector<48x64xbf16>, vector<64x64xf32> -> vector<64x64xf32>
    %c1_16 = arith.constant 1 : index
    %c0_17 = arith.constant 0 : index
    %c0_18 = arith.constant 0 : index
    %17 = vector.load %arg6[%c1_16, %c0_17, %c0_18] : memref<2x1x64xf32, #tpu.memory_space<vmem>>, vector<1x1x64xf32>
    %18 = vector.shape_cast %17 : vector<1x1x64xf32> to vector<1x64xf32>
    %19 = vector.broadcast %18 : vector<1x64xf32> to vector<64x64xf32>
    %20 = arith.addf %16, %19 : vector<64x64xf32>
    %21 = vector.shape_cast %20 : vector<64x64xf32> to vector<8x8x64xf32>
    %22 = arith.truncf %21 : vector<8x8x64xf32> to vector<8x8x64xbf16>
    %c0_19 = arith.constant 0 : index
    %c0_20 = arith.constant 0 : index
    %c0_21 = arith.constant 0 : index
    %23 = vector.load %arg13[%c0_19, %c0_20, %c0_21] : memref<8x8x64xbf16, #tpu.memory_space<vmem>>, vector<8x8x64xbf16>
    tpu.vector_store %arg13[%c0_19, %c0_20, %c0_21], %22 {strides = array<i32>} : memref<8x8x64xbf16, #tpu.memory_space<vmem>>, vector<8x8x64xbf16>,
    %c0_i32 = arith.constant 0 : i32
    %c8_i32 = arith.constant 8 : i32
    %24 = arith.subi %c8_i32, %1 : i32
    %25 = arith.addi %1, %24 : i32
    %c1_i32 = arith.constant 1 : i32
    scf.for %arg16 = %1 to %25 step %c1_i32  : i32 {
      %cst_63 = arith.constant 0.000000e+00 : f32
      %115 = vector.broadcast %cst_63 : f32 to vector<8x16xf32>
      %116 = arith.index_cast %arg16 : i32 to index
      %c0_64 = arith.constant 0 : index
      %c0_65 = arith.constant 0 : index
      %117 = vector.load %arg14[%116, %c0_64, %c0_65] : memref<8x8x16xf32, #tpu.memory_space<vmem>>, vector<1x8x16xf32>
      %118 = vector.shape_cast %117 : vector<1x8x16xf32> to vector<8x16xf32>
      %119 = vector.shape_cast %115 : vector<8x16xf32> to vector<1x8x16xf32>
      tpu.vector_store %arg14[%116, %c0_64, %c0_65], %119 {strides = array<i32>} : memref<8x8x16xf32, #tpu.memory_space<vmem>>, vector<1x8x16xf32>,
      %cst_66 = arith.constant 0.000000e+00 : f32
      %120 = vector.broadcast %cst_66 : f32 to vector<8x16xf32>
      %121 = arith.index_cast %arg16 : i32 to index
      %c0_67 = arith.constant 0 : index
      %c0_68 = arith.constant 0 : index
      %122 = vector.load %arg15[%121, %c0_67, %c0_68] : memref<8x8x16xf32, #tpu.memory_space<vmem>>, vector<1x8x16xf32>
      %123 = vector.shape_cast %122 : vector<1x8x16xf32> to vector<8x16xf32>
      %124 = vector.shape_cast %120 : vector<8x16xf32> to vector<1x8x16xf32>
      tpu.vector_store %arg15[%121, %c0_67, %c0_68], %124 {strides = array<i32>} : memref<8x8x16xf32, #tpu.memory_space<vmem>>, vector<1x8x16xf32>,
    }
    %cst_22 = arith.constant 0.000000e+00 : f32
    %26 = vector.broadcast %cst_22 : f32 to vector<8x16xf32>
    %c0_i32_23 = arith.constant 0 : i32
    %27 = arith.subi %1, %c0_i32_23 : i32
    %28 = arith.addi %c0_i32_23, %27 : i32
    %c1_i32_24 = arith.constant 1 : i32
    %29:4 = scf.for %arg16 = %c0_i32_23 to %28 step %c1_i32_24 iter_args(%arg17 = %26, %arg18 = %26, %arg19 = %26, %arg20 = %26) -> (vector<8x16xf32>, vector<8x16xf32>, vector<8x16xf32>, vector<8x16xf32>)  : i32 {
      %c1_i32_63 = arith.constant 1 : i32
      %115 = arith.subi %1, %c1_i32_63 : i32
      %116 = arith.subi %115, %arg16 : i32
      %117 = arith.index_cast %arg16 : i32 to index
      %c0_64 = arith.constant 0 : index
      %c0_65 = arith.constant 0 : index
      %118 = vector.load %arg12[%117, %c0_64, %c0_65] : memref<8x8x64xbf16, #tpu.memory_space<vmem>>, vector<1x8x64xbf16>
      %119 = vector.shape_cast %118 : vector<1x8x64xbf16> to vector<8x64xbf16>
      %120 = arith.extf %119 : vector<8x64xbf16> to vector<8x64xf32>
      %121 = arith.index_cast %116 : i32 to index
      %c0_66 = arith.constant 0 : index
      %c0_67 = arith.constant 0 : index
      %122 = vector.load %arg13[%121, %c0_66, %c0_67] : memref<8x8x64xbf16, #tpu.memory_space<vmem>>, vector<1x8x64xbf16>
      %123 = vector.shape_cast %122 : vector<1x8x64xbf16> to vector<8x64xbf16>
      %124 = arith.extf %123 : vector<8x64xbf16> to vector<8x64xf32>
      %125 = arith.truncf %arg17 : vector<8x16xf32> to vector<8x16xbf16>
      %c0_68 = arith.constant 0 : index
      %c0_69 = arith.constant 0 : index
      %c0_70 = arith.constant 0 : index
      %126 = vector.load %arg5[%c0_68, %c0_69, %c0_70] : memref<2x16x64xbf16, #tpu.memory_space<vmem>>, vector<1x16x64xbf16>
      %127 = vector.shape_cast %126 : vector<1x16x64xbf16> to vector<16x64xbf16>
      %cst_71 = arith.constant dense<0.000000e+00> : vector<8x64xf32>
      %128 = tpu.matmul %125, %127, %cst_71 {dimension_numbers = #tpu.dot_dimension_numbers<[1], [0], [0], [1], [0, 0, 1, 1], [], []>} : vector<8x16xbf16>, vector<16x64xbf16>, vector<8x64xf32> -> vector<8x64xf32>
      %129 = arith.addf %120, %128 : vector<8x64xf32>
      %130 = arith.truncf %arg19 : vector<8x16xf32> to vector<8x16xbf16>
      %c1_72 = arith.constant 1 : index
      %c0_73 = arith.constant 0 : index
      %c0_74 = arith.constant 0 : index
      %131 = vector.load %arg5[%c1_72, %c0_73, %c0_74] : memref<2x16x64xbf16, #tpu.memory_space<vmem>>, vector<1x16x64xbf16>
      %132 = vector.shape_cast %131 : vector<1x16x64xbf16> to vector<16x64xbf16>
      %cst_75 = arith.constant dense<0.000000e+00> : vector<8x64xf32>
      %133 = tpu.matmul %130, %132, %cst_75 {dimension_numbers = #tpu.dot_dimension_numbers<[1], [0], [0], [1], [0, 0, 1, 1], [], []>} : vector<8x16xbf16>, vector<16x64xbf16>, vector<8x64xf32> -> vector<8x64xf32>
      %134 = arith.addf %124, %133 : vector<8x64xf32>
      %135 = vector.extract_strided_slice %129 {offsets = [0, 0], sizes = [8, 16], strides = [1, 1]} : vector<8x64xf32> to vector<8x16xf32>
      %136 = arith.negf %135 : vector<8x16xf32>
      %137 = math.exp %136 : vector<8x16xf32>
      %cst_76 = arith.constant 1.000000e+00 : f32
      %138 = vector.broadcast %cst_76 : f32 to vector<8x16xf32>
      %139 = arith.addf %138, %137 : vector<8x16xf32>
      %140 = arith.divf %138, %139 : vector<8x16xf32>
      %141 = vector.extract_strided_slice %129 {offsets = [0, 16], sizes = [8, 16], strides = [1, 1]} : vector<8x64xf32> to vector<8x16xf32>
      %142 = arith.negf %141 : vector<8x16xf32>
      %143 = math.exp %142 : vector<8x16xf32>
      %cst_77 = arith.constant 1.000000e+00 : f32
      %144 = vector.broadcast %cst_77 : f32 to vector<8x16xf32>
      %145 = arith.addf %144, %143 : vector<8x16xf32>
      %146 = arith.divf %144, %145 : vector<8x16xf32>
      %147 = vector.extract_strided_slice %129 {offsets = [0, 32], sizes = [8, 16], strides = [1, 1]} : vector<8x64xf32> to vector<8x16xf32>
      %148 = math.tanh %147 : vector<8x16xf32>
      %149 = vector.extract_strided_slice %129 {offsets = [0, 48], sizes = [8, 16], strides = [1, 1]} : vector<8x64xf32> to vector<8x16xf32>
      %150 = arith.negf %149 : vector<8x16xf32>
      %151 = math.exp %150 : vector<8x16xf32>
      %cst_78 = arith.constant 1.000000e+00 : f32
      %152 = vector.broadcast %cst_78 : f32 to vector<8x16xf32>
      %153 = arith.addf %152, %151 : vector<8x16xf32>
      %154 = arith.divf %152, %153 : vector<8x16xf32>
      %155 = arith.mulf %146, %arg18 : vector<8x16xf32>
      %156 = arith.mulf %140, %148 : vector<8x16xf32>
      %157 = arith.addf %155, %156 : vector<8x16xf32>
      %158 = math.tanh %157 : vector<8x16xf32>
      %159 = arith.mulf %154, %158 : vector<8x16xf32>
      %160 = vector.extract_strided_slice %134 {offsets = [0, 0], sizes = [8, 16], strides = [1, 1]} : vector<8x64xf32> to vector<8x16xf32>
      %161 = arith.negf %160 : vector<8x16xf32>
      %162 = math.exp %161 : vector<8x16xf32>
      %cst_79 = arith.constant 1.000000e+00 : f32
      %163 = vector.broadcast %cst_79 : f32 to vector<8x16xf32>
      %164 = arith.addf %163, %162 : vector<8x16xf32>
      %165 = arith.divf %163, %164 : vector<8x16xf32>
      %166 = vector.extract_strided_slice %134 {offsets = [0, 16], sizes = [8, 16], strides = [1, 1]} : vector<8x64xf32> to vector<8x16xf32>
      %167 = arith.negf %166 : vector<8x16xf32>
      %168 = math.exp %167 : vector<8x16xf32>
      %cst_80 = arith.constant 1.000000e+00 : f32
      %169 = vector.broadcast %cst_80 : f32 to vector<8x16xf32>
      %170 = arith.addf %169, %168 : vector<8x16xf32>
      %171 = arith.divf %169, %170 : vector<8x16xf32>
      %172 = vector.extract_strided_slice %134 {offsets = [0, 32], sizes = [8, 16], strides = [1, 1]} : vector<8x64xf32> to vector<8x16xf32>
      %173 = math.tanh %172 : vector<8x16xf32>
      %174 = vector.extract_strided_slice %134 {offsets = [0, 48], sizes = [8, 16], strides = [1, 1]} : vector<8x64xf32> to vector<8x16xf32>
      %175 = arith.negf %174 : vector<8x16xf32>
      %176 = math.exp %175 : vector<8x16xf32>
      %cst_81 = arith.constant 1.000000e+00 : f32
      %177 = vector.broadcast %cst_81 : f32 to vector<8x16xf32>
      %178 = arith.addf %177, %176 : vector<8x16xf32>
      %179 = arith.divf %177, %178 : vector<8x16xf32>
      %180 = arith.mulf %171, %arg20 : vector<8x16xf32>
      %181 = arith.mulf %165, %173 : vector<8x16xf32>
      %182 = arith.addf %180, %181 : vector<8x16xf32>
      %183 = math.tanh %182 : vector<8x16xf32>
      %184 = arith.mulf %179, %183 : vector<8x16xf32>
      %185 = vector.broadcast %arg16 : i32 to vector<8x1xi32>
      %186 = arith.cmpi slt, %185, %0 : vector<8x1xi32>
      %187 = vector.broadcast %116 : i32 to vector<8x1xi32>
      %188 = arith.cmpi slt, %187, %0 : vector<8x1xi32>
      %cst_82 = arith.constant 0.000000e+00 : f32
      %189 = vector.shape_cast %186 : vector<8x1xi1> to vector<8x1xi1>
      %190 = vector.broadcast %189 : vector<8x1xi1> to vector<8x16xi1>
      %191 = vector.broadcast %cst_82 : f32 to vector<8x16xf32>
      %192 = arith.select %190, %159, %191 : vector<8x16xi1>, vector<8x16xf32>
      %193 = arith.index_cast %arg16 : i32 to index
      %c0_83 = arith.constant 0 : index
      %c0_84 = arith.constant 0 : index
      %194 = vector.load %arg14[%193, %c0_83, %c0_84] : memref<8x8x16xf32, #tpu.memory_space<vmem>>, vector<1x8x16xf32>
      %195 = vector.shape_cast %194 : vector<1x8x16xf32> to vector<8x16xf32>
      %196 = vector.shape_cast %192 : vector<8x16xf32> to vector<1x8x16xf32>
      tpu.vector_store %arg14[%193, %c0_83, %c0_84], %196 {strides = array<i32>} : memref<8x8x16xf32, #tpu.memory_space<vmem>>, vector<1x8x16xf32>,
      %cst_85 = arith.constant 0.000000e+00 : f32
      %197 = vector.shape_cast %188 : vector<8x1xi1> to vector<8x1xi1>
      %198 = vector.broadcast %197 : vector<8x1xi1> to vector<8x16xi1>
      %199 = vector.broadcast %cst_85 : f32 to vector<8x16xf32>
      %200 = arith.select %198, %184, %199 : vector<8x16xi1>, vector<8x16xf32>
      %201 = arith.index_cast %116 : i32 to index
      %c0_86 = arith.constant 0 : index
      %c0_87 = arith.constant 0 : index
      %202 = vector.load %arg15[%201, %c0_86, %c0_87] : memref<8x8x16xf32, #tpu.memory_space<vmem>>, vector<1x8x16xf32>
      %203 = vector.shape_cast %202 : vector<1x8x16xf32> to vector<8x16xf32>
      %204 = vector.shape_cast %200 : vector<8x16xf32> to vector<1x8x16xf32>
      tpu.vector_store %arg15[%201, %c0_86, %c0_87], %204 {strides = array<i32>} : memref<8x8x16xf32, #tpu.memory_space<vmem>>, vector<1x8x16xf32>,
      %205 = vector.shape_cast %186 : vector<8x1xi1> to vector<8x1xi1>
      %206 = vector.broadcast %205 : vector<8x1xi1> to vector<8x16xi1>
      %207 = arith.select %206, %159, %arg17 : vector<8x16xi1>, vector<8x16xf32>
      %208 = vector.shape_cast %186 : vector<8x1xi1> to vector<8x1xi1>
      %209 = vector.broadcast %208 : vector<8x1xi1> to vector<8x16xi1>
      %210 = arith.select %209, %157, %arg18 : vector<8x16xi1>, vector<8x16xf32>
      %211 = vector.shape_cast %188 : vector<8x1xi1> to vector<8x1xi1>
      %212 = vector.broadcast %211 : vector<8x1xi1> to vector<8x16xi1>
      %213 = arith.select %212, %184, %arg19 : vector<8x16xi1>, vector<8x16xf32>
      %214 = vector.shape_cast %188 : vector<8x1xi1> to vector<8x1xi1>
      %215 = vector.broadcast %214 : vector<8x1xi1> to vector<8x16xi1>
      %216 = arith.select %215, %182, %arg20 : vector<8x16xi1>, vector<8x16xf32>
      scf.yield %207, %210, %213, %216 : vector<8x16xf32>, vector<8x16xf32>, vector<8x16xf32>, vector<8x16xf32>
    }
    %c0_25 = arith.constant 0 : index
    %c0_26 = arith.constant 0 : index
    %30 = vector.load %arg3[%c0_25, %c0_26] : memref<8x16xf32, #tpu.memory_space<vmem>>, vector<8x16xf32>
    %31 = arith.truncf %30 : vector<8x16xf32> to vector<8x16xbf16>
    %c0_27 = arith.constant 0 : index
    %c0_28 = arith.constant 0 : index
    %32 = vector.load %arg7[%c0_27, %c0_28] : memref<16x32xbf16, #tpu.memory_space<vmem>>, vector<16x32xbf16>
    %cst_29 = arith.constant dense<0.000000e+00> : vector<8x32xf32>
    %33 = tpu.matmul %31, %32, %cst_29 {dimension_numbers = #tpu.dot_dimension_numbers<[1], [0], [0], [1], [0, 0, 1, 1], [], []>} : vector<8x16xbf16>, vector<16x32xbf16>, vector<8x32xf32> -> vector<8x32xf32>
    %c0_30 = arith.constant 0 : index
    %c0_31 = arith.constant 0 : index
    %34 = vector.load %arg9[%c0_30, %c0_31] : memref<1x32xf32, #tpu.memory_space<vmem>>, vector<1x32xf32>
    %35 = vector.broadcast %34 : vector<1x32xf32> to vector<8x32xf32>
    %36 = arith.addf %33, %35 : vector<8x32xf32>
    %c0_32 = arith.constant 0 : index
    %c0_33 = arith.constant 0 : index
    %37 = vector.load %arg8[%c0_32, %c0_33] : memref<16x32xbf16, #tpu.memory_space<vmem>>, vector<16x32xbf16>
    %cst_34 = arith.constant dense<0.000000e+00> : vector<8x32xf32>
    %38 = tpu.matmul %31, %37, %cst_34 {dimension_numbers = #tpu.dot_dimension_numbers<[1], [0], [0], [1], [0, 0, 1, 1], [], []>} : vector<8x16xbf16>, vector<16x32xbf16>, vector<8x32xf32> -> vector<8x32xf32>
    %c0_35 = arith.constant 0 : index
    %c0_36 = arith.constant 0 : index
    %39 = vector.load %arg10[%c0_35, %c0_36] : memref<1x32xf32, #tpu.memory_space<vmem>>, vector<1x32xf32>
    %40 = vector.broadcast %39 : vector<1x32xf32> to vector<8x32xf32>
    %41 = arith.addf %38, %40 : vector<8x32xf32>
    %42 = vector.extract_strided_slice %36 {offsets = [0, 0], sizes = [8, 16], strides = [1, 1]} : vector<8x32xf32> to vector<8x16xf32>
    %cst_37 = arith.constant 1.000000e+00 : f32
    %43 = vector.broadcast %cst_37 : f32 to vector<8x16xf32>
    %44 = arith.addf %43, %42 : vector<8x16xf32>
    %45 = vector.extract_strided_slice %36 {offsets = [0, 16], sizes = [8, 16], strides = [1, 1]} : vector<8x32xf32> to vector<8x16xf32>
    %cst_38 = arith.constant 1.000000e+00 : f32
    %46 = vector.broadcast %cst_38 : f32 to vector<8x16xf32>
    %47 = arith.addf %46, %45 : vector<8x16xf32>
    %48 = vector.extract_strided_slice %41 {offsets = [0, 0], sizes = [8, 16], strides = [1, 1]} : vector<8x32xf32> to vector<8x16xf32>
    %49 = vector.extract_strided_slice %41 {offsets = [0, 16], sizes = [8, 16], strides = [1, 1]} : vector<8x32xf32> to vector<8x16xf32>
    %c0_39 = arith.constant 0 : index
    %c0_40 = arith.constant 0 : index
    %c0_41 = arith.constant 0 : index
    %50 = vector.load %arg14[%c0_39, %c0_40, %c0_41] : memref<8x8x16xf32, #tpu.memory_space<vmem>>, vector<8x8x16xf32>
    %c0_42 = arith.constant 0 : index
    %c0_43 = arith.constant 0 : index
    %c0_44 = arith.constant 0 : index
    %51 = vector.load %arg15[%c0_42, %c0_43, %c0_44] : memref<8x8x16xf32, #tpu.memory_space<vmem>>, vector<8x8x16xf32>
    %cst_45 = arith.constant dense<0.000000e+00> : vector<8x8xf32>
    %52 = vector.multi_reduction <add>, %50, %cst_45 [2] : vector<8x8x16xf32> to vector<8x8xf32>
    %53 = vector.shape_cast %52 : vector<8x8xf32> to vector<8x8x1xf32>
    %cst_46 = arith.constant dense<0.000000e+00> : vector<8x8xf32>
    %54 = vector.multi_reduction <add>, %51, %cst_46 [2] : vector<8x8x16xf32> to vector<8x8xf32>
    %55 = vector.shape_cast %54 : vector<8x8xf32> to vector<8x8x1xf32>
    %56 = arith.addf %53, %55 : vector<8x8x1xf32>
    %cst_47 = arith.constant 3.125000e-02 : f32
    %57 = vector.broadcast %cst_47 : f32 to vector<8x8x1xf32>
    %58 = arith.mulf %56, %57 : vector<8x8x1xf32>
    %59 = vector.broadcast %58 : vector<8x8x1xf32> to vector<8x8x16xf32>
    %60 = arith.subf %50, %59 : vector<8x8x16xf32>
    %61 = vector.broadcast %58 : vector<8x8x1xf32> to vector<8x8x16xf32>
    %62 = arith.subf %51, %61 : vector<8x8x16xf32>
    %63 = arith.mulf %60, %60 : vector<8x8x16xf32>
    %cst_48 = arith.constant dense<0.000000e+00> : vector<8x8xf32>
    %64 = vector.multi_reduction <add>, %63, %cst_48 [2] : vector<8x8x16xf32> to vector<8x8xf32>
    %65 = vector.shape_cast %64 : vector<8x8xf32> to vector<8x8x1xf32>
    %66 = arith.mulf %62, %62 : vector<8x8x16xf32>
    %cst_49 = arith.constant dense<0.000000e+00> : vector<8x8xf32>
    %67 = vector.multi_reduction <add>, %66, %cst_49 [2] : vector<8x8x16xf32> to vector<8x8xf32>
    %68 = vector.shape_cast %67 : vector<8x8xf32> to vector<8x8x1xf32>
    %69 = arith.addf %65, %68 : vector<8x8x1xf32>
    %cst_50 = arith.constant 3.125000e-02 : f32
    %70 = vector.broadcast %cst_50 : f32 to vector<8x8x1xf32>
    %71 = arith.mulf %69, %70 : vector<8x8x1xf32>
    %cst_51 = arith.constant 9.99999974E-6 : f32
    %72 = vector.broadcast %cst_51 : f32 to vector<8x8x1xf32>
    %73 = arith.addf %71, %72 : vector<8x8x1xf32>
    %74 = math.rsqrt %73 : vector<8x8x1xf32>
    %75 = vector.shape_cast %44 : vector<8x16xf32> to vector<1x8x16xf32>
    %76 = vector.broadcast %74 : vector<8x8x1xf32> to vector<8x8x16xf32>
    %77 = arith.mulf %60, %76 : vector<8x8x16xf32>
    %78 = vector.broadcast %75 : vector<1x8x16xf32> to vector<8x8x16xf32>
    %79 = arith.mulf %78, %77 : vector<8x8x16xf32>
    %80 = vector.shape_cast %48 : vector<8x16xf32> to vector<1x8x16xf32>
    %81 = vector.broadcast %80 : vector<1x8x16xf32> to vector<8x8x16xf32>
    %82 = arith.addf %79, %81 : vector<8x8x16xf32>
    %83 = vector.shape_cast %47 : vector<8x16xf32> to vector<1x8x16xf32>
    %84 = vector.broadcast %74 : vector<8x8x1xf32> to vector<8x8x16xf32>
    %85 = arith.mulf %62, %84 : vector<8x8x16xf32>
    %86 = vector.broadcast %83 : vector<1x8x16xf32> to vector<8x8x16xf32>
    %87 = arith.mulf %86, %85 : vector<8x8x16xf32>
    %88 = vector.shape_cast %49 : vector<8x16xf32> to vector<1x8x16xf32>
    %89 = vector.broadcast %88 : vector<1x8x16xf32> to vector<8x8x16xf32>
    %90 = arith.addf %87, %89 : vector<8x8x16xf32>
    %91 = tpu.iota {dimensions = array<i32: 0>} : vector<8x8x1xi32>
    %c0_i32_52 = arith.constant 0 : i32
    %92 = vector.broadcast %c0_i32_52 : i32 to vector<8x8x1xi32>
    %93 = arith.addi %91, %92 : vector<8x8x1xi32>
    %94 = vector.shape_cast %0 : vector<8x1xi32> to vector<1x8x1xi32>
    %95 = vector.broadcast %94 : vector<1x8x1xi32> to vector<8x8x1xi32>
    %96 = arith.cmpi slt, %93, %95 : vector<8x8x1xi32>
    %cst_53 = arith.constant 0.000000e+00 : f32
    %97 = vector.shape_cast %96 : vector<8x8x1xi1> to vector<8x8x1xi1>
    %98 = vector.broadcast %97 : vector<8x8x1xi1> to vector<8x8x16xi1>
    %99 = vector.broadcast %cst_53 : f32 to vector<8x8x16xf32>
    %100 = arith.select %98, %82, %99 : vector<8x8x16xi1>, vector<8x8x16xf32>
    %c0_54 = arith.constant 0 : index
    %c0_55 = arith.constant 0 : index
    %c0_56 = arith.constant 0 : index
    %101 = vector.load %arg11[%c0_54, %c0_55, %c0_56] : memref<8x8x48xf32, #tpu.memory_space<vmem>>, vector<8x8x16xf32>
    tpu.vector_store %arg11[%c0_54, %c0_55, %c0_56], %100 {strides = array<i32>} : memref<8x8x48xf32, #tpu.memory_space<vmem>>, vector<8x8x16xf32>,
    %cst_57 = arith.constant 0.000000e+00 : f32
    %102 = vector.shape_cast %96 : vector<8x8x1xi1> to vector<8x8x1xi1>
    %103 = vector.broadcast %102 : vector<8x8x1xi1> to vector<8x8x16xi1>
    %104 = vector.broadcast %cst_57 : f32 to vector<8x8x16xf32>
    %105 = arith.select %103, %90, %104 : vector<8x8x16xi1>, vector<8x8x16xf32>
    %c0_58 = arith.constant 0 : index
    %c0_59 = arith.constant 0 : index
    %c16 = arith.constant 16 : index
    %106 = vector.load %arg11[%c0_58, %c0_59, %c16] : memref<8x8x48xf32, #tpu.memory_space<vmem>>, vector<8x8x16xf32>
    tpu.vector_store %arg11[%c0_58, %c0_59, %c16], %105 {strides = array<i32>} : memref<8x8x48xf32, #tpu.memory_space<vmem>>, vector<8x8x16xf32>,
    %107 = vector.shape_cast %30 : vector<8x16xf32> to vector<1x8x16xf32>
    %cst_60 = arith.constant 0.000000e+00 : f32
    %108 = vector.shape_cast %96 : vector<8x8x1xi1> to vector<8x8x1xi1>
    %109 = vector.broadcast %108 : vector<8x8x1xi1> to vector<8x8x16xi1>
    %110 = vector.shape_cast %107 : vector<1x8x16xf32> to vector<1x8x16xf32>
    %111 = vector.broadcast %110 : vector<1x8x16xf32> to vector<8x8x16xf32>
    %112 = vector.broadcast %cst_60 : f32 to vector<8x8x16xf32>
    %113 = arith.select %109, %111, %112 : vector<8x8x16xi1>, vector<8x8x16xf32>
    %c0_61 = arith.constant 0 : index
    %c0_62 = arith.constant 0 : index
    %c32 = arith.constant 32 : index
    %114 = vector.load %arg11[%c0_61, %c0_62, %c32] : memref<8x8x48xf32, #tpu.memory_space<vmem>>, vector<8x8x16xf32>
    tpu.vector_store %arg11[%c0_61, %c0_62, %c32], %113 {strides = array<i32>} : memref<8x8x48xf32, #tpu.memory_space<vmem>>, vector<8x8x16xf32>,
    return
  }
}

</mosaic_0001>

<bundles_post_ra>
// kernel: duration_encoder_forward.2
= control target key start
LH: loop header
LB: loop body
LE: loop exit
PB: predicated region body
PF: predicated region fallthrough
CT: control target
= control target key end

     0   :  { %vm82_vm0 = vcmask 392192   ;;  %vm132_vm1 = vcmask 519168   ;;  %s1903_s0 = inlined_call_operand.<no memory space> [shape: s32[1], index: 0, kind: input, shape index: {}]   ;;  %s1904_s1 = inlined_call_operand.vmem [shape: s32[8,1], index: 1, kind: input, shape index: {}]   ;;  %s1905_s3 = inlined_call_operand.vmem [shape: f32[8,16], index: 3, kind: input, shape index: {}]   ;;  %s1906_s4 = inlined_call_operand.vmem [shape: bf16[2,48,64], index: 4, kind: input, shape index: {}]   ;;  %s1907_s5 = inlined_call_operand.vmem [shape: bf16[2,16,64], index: 5, kind: input, shape index: {}]   ;;  %s1908_s7 = inlined_call_operand.vmem [shape: bf16[16,32], index: 7, kind: input, shape index: {}]   ;;  %s1909_s8 = inlined_call_operand.vmem [shape: bf16[16,32], index: 8, kind: input, shape index: {}]   ;;  %s1910_s9 = inlined_call_operand.vmem [shape: f32[1,32], index: 9, kind: input, shape index: {}]   ;;  %s1911_s10 = inlined_call_operand.vmem [shape: f32[1,32], index: 10, kind: input, shape index: {}]   ;;  %s1912_s11 = inlined_call_operand.vmem [shape: f32[8,8,48], index: 11, kind: output, shape index: {}]   ;;  %s1913_s2 = inlined_call_operand.vmem [shape: f32[64,48], index: 2, kind: input, shape index: {}]   ;;  %s1914_s6 = inlined_call_operand.vmem [shape: f32[2,1,64], index: 6, kind: input, shape index: {}]  }
   0x1   :  { %v1289_v0 = vld [vmem:[%s1904_s1] sm:$0xff]  ;;  %v1057_v1 = vld [vmem:[%s1906_s4 + $0x10] sm:$0xff]  ;;  %v1060_v2 = vld [vmem:[%s1906_s4 + $0x28] sm:$0xff]  ;;  %p964_p0 = scmp.ge.s32.totalorder %s1903_s0, 8 }
   0x2   :  { %100 = vmatpush.bf16.msra.mxu0 %v1057_v1  ;;  %1065 = vmatpush.bf16.msra.mxu2 %v1057_v1  ;;  %v1056_v3 = vld [vmem:[%s1906_s4 + $0x8] sm:$0xff]  ;;  %v1059_v4 = vld [vmem:[%s1906_s4 + $0x20] sm:$0xff]  ;;  %v1058_v10 = vld [vmem:[%s1906_s4 + $0x18] sm:$0xff]  ;;  %s1193_s12 = smov (!%p964_p0), %s1903_s0  }
   0x3   :  { %176 = vmatpush.bf16.msra.mxu1 %v1060_v2  ;;  %1068 = vmatpush.bf16.msra.mxu3 %v1060_v2  ;;  %v1055_v5 = vld [vmem:[%s1906_s4] sm:$0xff]  ;;  %v43_v7 = vld [vmem:[%s1913_s2 + $0x8] sm:$0xff]  ;;  %v44_v13 = vld [vmem:[%s1913_s2 + $0x10] sm:$0xff] }
   0x4   :  { %v42_v6 = vld [vmem:[%s1913_s2] sm:$0xff]  ;;  %v47_v9 = vld [vmem:[%s1913_s2 + $0x28] sm:$0xff]  ;;  %v45_v14 = vld [vmem:[%s1913_s2 + $0x18] sm:$0xff] }
   0x5   :  { %v46_v8 = vld [vmem:[%s1913_s2 + $0x20] sm:$0xff]  ;;  %v50_v11 = vpack.c.bf16 %v43_v7, %v42_v6  ;;  %v48_v15 = vld [vmem:[%s1913_s2 + $0x30] sm:$0xff]  ;;  %v49_v16 = vld [vmem:[%s1913_s2 + $0x38] sm:$0xff]  ;;  %v51_v17 = vpack.c.bf16 %v45_v14, %v44_v13 }
   0x6   :  { %101 = vmatpush.bf16.msra.mxu0 %v1056_v3  ;;  %1066 = vmatpush.bf16.msra.mxu2 %v1056_v3  ;;  %v52_v12 = vpack.c.bf16 %v47_v9, %v46_v8  ;;  %v53_v18 = vpack.c.bf16 %v49_v16, %v48_v15  ;;  %v1128_v19 = vld [vmem:[%s1914_s6] ss:$0 sm:$0xff]  ;;  %v1129_v20 = vld [vmem:[%s1914_s6 + $0x1] ss:$0 sm:$0xff] }
   0x7   :  { %177 = vmatpush.bf16.msra.mxu1 %v1059_v4  ;;  %1069 = vmatpush.bf16.msra.mxu3 %v1059_v4 }
   0xa   :  { %102 = vmatpush.bf16.msra.mxu0 %v1055_v5  ;;  %1067 = vmatpush.bf16.msra.mxu2 %v1055_v5 }
   0xb   :  { %178 = vmatpush.bf16.msra.mxu1 %v1058_v10  ;;  %1070 = vmatpush.bf16.msra.mxu3 %v1058_v10 }
   0xd   :  { %997 = vmatmul.msk.bf16.vlgmr.msra.gmra.mxu0 %vm82_vm0, %v50_v11  ;;  %999 = vmatmul.msk.bf16.vlgmr.msra.gmra.mxu2 %vm82_vm0, %v52_v12 }
   0xe   :  { %1020 = vmatmul.msk.bf16.vlgmr.msra.gmra.mxu1 %vm82_vm0, %v50_v11  ;;  %1022 = vmatmul.msk.bf16.vlgmr.msra.gmra.mxu3 %vm82_vm0, %v52_v12 }
  0x1d   :  { %998 = vmatmul.msk.bf16.gmra.mxu0 %vm82_vm0, %v51_v17  ;;  %1000 = vmatmul.msk.bf16.gmra.mxu2 %vm82_vm0, %v53_v18 }
  0x1e   :  { %1021 = vmatmul.msk.bf16.gmra.mxu1 %vm82_vm0, %v51_v17  ;;  %1023 = vmatmul.msk.bf16.gmra.mxu3 %vm82_vm0, %v53_v18 }
  0x8a   :  { %v104_v21 = vpop.f32.mrf.mxu0 }
  0x8b   :  { %v105_v22 = vadd.f32 %v1128_v19, %v104_v21  ;;  %v180_v23 = vpop.f32.mrf.mxu1 }
  0x8c   :  { %v181_v24 = vadd.f32 %v1129_v20, %v180_v23 }
  0x8d   :  { %v124_v25 = vpack.c.bf16 %v105_v22, %v105_v22 }
  0x8e   :  { %v200_v26 = vpack.c.bf16 %v181_v24, %v181_v24 }
  0x8f   :  { %133 = vst.msk [vmem:[#allocation2] sm:$0xf] %vm132_vm1, %v124_v25 }
  0x90   :  { %208 = vst.msk [vmem:[#allocation3] sm:$0xf] %vm132_vm1, %v200_v26  ;;  %v114_v27 = vpop.f32.mrf.mxu2 }
  0x91   :  { %v115_v28 = vadd.f32 %v1128_v19, %v114_v27  ;;  %v190_v29 = vpop.f32.mrf.mxu3 }
  0x92   :  { %v191_v30 = vadd.f32 %v1129_v20, %v190_v29  ;;  %v106_v31 = vpop.f32.mrf.mxu0 }
  0x93   :  { %v128_v32 = vpack.c.bf16 %v115_v28, %v115_v28  ;;  %v107_v33 = vadd.f32 %v1128_v19, %v106_v31  ;;  %v182_v34 = vpop.f32.mrf.mxu1 }
  0x94   :  { %v204_v35 = vpack.c.bf16 %v191_v30, %v191_v30  ;;  %v183_v36 = vadd.f32 %v1129_v20, %v182_v34 }
  0x95   :  { %137 = vst.msk [vmem:[#allocation2 + $0x10] sm:$0xf] %vm132_vm1, %v128_v32  ;;  %v125_v37 = vpack.c.bf16 %v107_v33, %v107_v33 }
  0x96   :  { %212 = vst.msk [vmem:[#allocation3 + $0x10] sm:$0xf] %vm132_vm1, %v204_v35  ;;  %v201_v38 = vpack.c.bf16 %v183_v36, %v183_v36 }
  0x97   :  { %134 = vst.msk [vmem:[#allocation2 + $0x4] sm:$0xf] %vm132_vm1, %v125_v37 }
  0x98   :  { %209 = vst.msk [vmem:[#allocation3 + $0x4] sm:$0xf] %vm132_vm1, %v201_v38  ;;  %v116_v39 = vpop.f32.mrf.mxu2 }
  0x99   :  { %v117_v40 = vadd.f32 %v1128_v19, %v116_v39  ;;  %v192_v41 = vpop.f32.mrf.mxu3 }
  0x9a   :  { %v193_v42 = vadd.f32 %v1129_v20, %v192_v41  ;;  %v109_v43 = vpop.f32.mrf.mxu0 }
  0x9b   :  { %v129_v44 = vpack.c.bf16 %v117_v40, %v117_v40  ;;  %v110_v45 = vadd.f32 %v1128_v19, %v109_v43  ;;  %v185_v46 = vpop.f32.mrf.mxu1 }
  0x9c   :  { %v205_v47 = vpack.c.bf16 %v193_v42, %v193_v42  ;;  %v186_v48 = vadd.f32 %v1129_v20, %v185_v46 }
  0x9d   :  { %138 = vst.msk [vmem:[#allocation2 + $0x14] sm:$0xf] %vm132_vm1, %v129_v44  ;;  %v126_v49 = vpack.c.bf16 %v110_v45, %v110_v45 }
  0x9e   :  { %213 = vst.msk [vmem:[#allocation3 + $0x14] sm:$0xf] %vm132_vm1, %v205_v47  ;;  %v202_v50 = vpack.c.bf16 %v186_v48, %v186_v48 }
  0x9f   :  { %135 = vst.msk [vmem:[#allocation2 + $0x8] sm:$0xf] %vm132_vm1, %v126_v49 }
  0xa0   :  { %210 = vst.msk [vmem:[#allocation3 + $0x8] sm:$0xf] %vm132_vm1, %v202_v50  ;;  %v119_v51 = vpop.f32.mrf.mxu2 }
  0xa1   :  { %v120_v52 = vadd.f32 %v1128_v19, %v119_v51  ;;  %v195_v53 = vpop.f32.mrf.mxu3 }
  0xa2   :  { %v196_v54 = vadd.f32 %v1129_v20, %v195_v53  ;;  %v111_v55 = vpop.f32.mrf.mxu0 }
  0xa3   :  { %v130_v56 = vpack.c.bf16 %v120_v52, %v120_v52  ;;  %v112_v57 = vadd.f32 %v1128_v19, %v111_v55  ;;  %v187_v58 = vpop.f32.mrf.mxu1 }
  0xa4   :  { %v206_v59 = vpack.c.bf16 %v196_v54, %v196_v54  ;;  %v188_v60 = vadd.f32 %v1129_v20, %v187_v58 }
  0xa5   :  { %139 = vst.msk [vmem:[#allocation2 + $0x18] sm:$0xf] %vm132_vm1, %v130_v56  ;;  %v127_v61 = vpack.c.bf16 %v112_v57, %v112_v57 }
  0xa6   :  { %214 = vst.msk [vmem:[#allocation3 + $0x18] sm:$0xf] %vm132_vm1, %v206_v59  ;;  %v203_v62 = vpack.c.bf16 %v188_v60, %v188_v60 }
  0xa7   :  { %136 = vst.msk [vmem:[#allocation2 + $0xc] sm:$0xf] %vm132_vm1, %v127_v61 }
  0xa8   :  { %211 = vst.msk [vmem:[#allocation3 + $0xc] sm:$0xf] %vm132_vm1, %v203_v62  ;;  %v121_v63 = vpop.f32.mrf.mxu2 }
  0xa9   :  { %v122_v1 = vadd.f32 %v1128_v19, %v121_v63  ;;  %v197_v2 = vpop.f32.mrf.mxu3 }
  0xaa   :  { %v198_v3 = vadd.f32 %v1129_v20, %v197_v2  ;;  %965 = sbr.rel (%p964_p0) target bundleno = 184 (0xb8), region = 81 }
  0xab   :  { %v131_v4 = vpack.c.bf16 %v122_v1, %v122_v1 }
  0xac   :  { %v207_v5 = vpack.c.bf16 %v198_v3, %v198_v3 }
  0xad   :  { %140 = vst.msk [vmem:[#allocation2 + $0x1c] sm:$0xf] %vm132_vm1, %v131_v4 }
  0xae   :  { %215 = vst.msk [vmem:[#allocation3 + $0x1c] sm:$0xf] %vm132_vm1, %v207_v5 }
  0xaf LB: > { %vm224_vm2 = vcmask 130048   ;;  %s1024_s13 = sshll.u32 %s1195_s12, 3  ;;  %v1217_v6 = vmov 0.0   ;;  %s219_s12 = sadd.s32 1, %s1195_s12   ;;  %s1195_s12 = sphi %s1193_s12, %s219_s12  }
  0xb0   : > { %s223_s14 = scalar_lea.vmem [#allocation4], %s1024_s13  ;;  %s226_s15 = scalar_lea.vmem [#allocation5], %s1024_s13 }
  0xb1   : > { %225 = vst.msk [vmem:[%s223_s14] sm:$0xff] %vm224_vm2, %v1217_v6  ;;  %p218_p1 = scmp.ge.s32.totalorder %s219_s12, 8 }
  0xb2   : > { %227 = vst.msk [vmem:[%s226_s15] sm:$0xff] %vm224_vm2, %v1217_v6 }
  0xb3   :  { %221 = sbr.rel (!%p218_p1) target bundleno = 175 (0xaf), region = 87 }
  0xb8 PF:  { %p1025_p2 = scmp.le.s32.totalorder %s1903_s0, 0 }
  0xb9   :  { %s1380_s18 = smov (!%p1025_p2), 0  }
  0xba   :  { %974 = sbr.rel (%p1025_p2) target bundleno = 895 (0x37f), region = 92 }
  0xbf   :  { %v1372_v7 = vmov 0.0   ;;  %v1374_v8 = vmov 0.0   ;;  %v1376_v9 = vmov 0.0   ;;  %v1378_v10 = vmov 0.0  }
  0xc0 LB: > { %v1061_v11 = vld [vmem:[%s1907_s5] sm:$0xff]  ;;  %v248_v12 = vpack.c.bf16 %v1211_v10, %v1211_v10  ;;  %s1218_s4 = smov 80   ;;  %v278_v13 = vpack.c.bf16 %v1203_v8, %v1203_v8  ;;  %v1062_v14 = vld [vmem:[%s1907_s5 + $0x8] sm:$0xff]  ;;  %vm260_vm3 = vcmask 130048   ;;  %s1027_s23 = sshll.u32 %s1215_s18, 2  ;;  %v1220_v36 = vmov 0   ;;  %s1215_s18 = sphi %s1380_s18, %s231_s18   ;;  %v1211_v10 = vphi %v1378_v10, %v412_v10   ;;  %v1207_v9 = vphi %v1376_v9, %v413_v9   ;;  %v1203_v8 = vphi %v1374_v8, %v414_v8   ;;  %v1199_v7 = vphi %v1372_v7, %v415_v7  }
  0xc1   : > { %271 = vmatpush.bf16.msra.mxu0 %v1061_v11  ;;  %301 = vmatpush.bf16.msra.mxu1 %v1062_v14  ;;  %s1026_s26 = sadd.s32 4294967295, %s1903_s0  ;;  %s241_s27 = scalar_lea.vmem [#allocation2], %s1027_s23  ;;  %v382_v60 = vstv %s1215_s18 }
  0xc2   : > { %252 = vrot.lane.b32.xlu0 %v248_v12, %s1218_s4  ;;  %s1416_s1 = ssub.s32 %s1026_s26, %s1215_s18  ;;  %v242_v17 = vld [vmem:[%s241_s27] sm:$0xf]  ;;  %s1219_s6 = smov 96   ;;  %1130 = vset.pattern.permute.xlu2 %v1220_v36  ;;  %vm383_vm12 = vcmp.lt.s32.totalorder %v382_v60, %v1289_v0 }
  0xc3   : > { %s1028_s28 = sshll.u32 %s1416_s1, 2  ;;  %v243_v18 = vunpack.c.l.bf16 %v242_v17  ;;  %1131 = vset.pattern.permute.xlu0 %v1220_v36  ;;  %s1221_s29 = smov 16   ;;  %v386_v61 = vsel %vm383_vm12, 1, %v1220_v36  ;;  %v384_v6 = vstv %s1416_s1 }
  0xc4   : > { %s245_s2 = scalar_lea.vmem [#allocation3], %s1028_s28  ;;  %s1222_s30 = smov 32   ;;  %vm385_vm13 = vcmp.lt.s32.totalorder %v384_v6, %v1289_v0 }
  0xc5   : > { %v246_v21 = vld [vmem:[%s245_s2] sm:$0xf]  ;;  %v399_v11 = vsel %vm385_vm13, 1, %v1220_v36  ;;  %s1044_s12 = sshll.u32 %s1416_s1, 3  ;;  %s1043_s14 = sshll.u32 %s1215_s18, 3 }
  0xc6   : > { %v247_v22 = vunpack.c.l.bf16 %v246_v21  ;;  %s410_s13 = scalar_lea.vmem [#allocation5], %s1044_s12  ;;  %s397_s15 = scalar_lea.vmem [#allocation4], %s1043_s14 }
  0xc7   : > { %s231_s18 = sadd.s32 1, %s1215_s18  }
  0xc8   : > { %p230_p3 = scmp.ge.s32.totalorder %s231_s18, %s1903_s0 }
  0xca   : > { %283 = vrot.lane.b32.xlu0 %v278_v13, %s1218_s4 }
 0x134   : > { %v253_v15 = vpop.permute.xlu0 %252 }
 0x135   : > { %1033 = vmatmul.msk.bf16.vlgmr.msra.gmra.mxu0 %vm260_vm3, %v253_v15 }
 0x13c   : > { %v284_v16 = vpop.permute.xlu0 %283 }
 0x13d   : > { %1040 = vmatmul.msk.bf16.vlgmr.msra.gmra.mxu1 %vm260_vm3, %v284_v16 }
 0x1b2   : > { %v273_v19 = vpop.f32.mrf.mxu0 }
 0x1b3   : > { %v277_v20 = vadd.f32 %v273_v19, %v243_v18 }
 0x1b5   : > { %1132 = vtanh.f32 %v277_v20  ;;  %v1041_v29 = vmul.f32 -1.442695, %v277_v20 }
 0x1ba   : > { %v275_v23 = vpop.f32.mrf.mxu0  ;;  %v303_v24 = vpop.f32.mrf.mxu1 }
 0x1bb   : > { %v1133_v25 = vpop.eup %1132  ;;  %v307_v26 = vadd.f32 %v303_v24, %v247_v22 }
 0x1bc   : > { %330 = vrot.lane.b32.xlu1 %v1133_v25, %s1219_s6 }
 0x1bd   : > { %1134 = vtanh.f32 %v307_v26  ;;  %v1042_v30 = vmul.f32 -1.442695, %v307_v26 }
 0x1be   : > { %1136 = vpow2.f32 %v1041_v29 }
 0x1bf   : > { %1138 = vpow2.f32 %v1042_v30 }
 0x1c2   : > { %v305_v27 = vpop.f32.mrf.mxu1 }
 0x1c3   : > { %v1135_v28 = vpop.eup %1134 }
 0x1c4   : > { %367 = vrot.lane.b32.xlu1 %v1135_v28, %s1219_s6  ;;  %v1137_v31 = vpop.eup %1136 }
 0x1c5   : > { %v311_v32 = vadd.f32 1.0, %v1137_v31  ;;  %v1139_v33 = vpop.eup %1138 }
 0x1c6   : > { %v348_v34 = vadd.f32 1.0, %v1139_v33 }
 0x1c7   : > { %1140 = vrcp.f32 %v311_v32  ;;  %v323_v44 = vand.u32 2147483648, %v311_v32  ;;  %vm317_vm5 = vweird.f32 %v311_v32  ;;  %v321_v45 = vand.u32 2147483647, %v311_v32 }
 0x1c8   : > { %1142 = vrcp.f32 %v348_v34  ;;  %vm354_vm8 = vweird.f32 %v348_v34  ;;  %v360_v51 = vand.u32 2147483648, %v348_v34  ;;  %v358_v54 = vand.u32 2147483647, %v348_v34 }
 0x1c9   : > { %v324_v48 = vor.u32 1.1754944e-38, %v323_v44  ;;  %vm322_vm7 = vcmp.eq.f32.partialorder %v321_v45, 8.507059e+37 }
 0x1ca   : > { %v361_v55 = vor.u32 1.1754944e-38, %v360_v51  ;;  %vm359_vm11 = vcmp.eq.f32.partialorder %v358_v54, 8.507059e+37 }
 0x1cd   : > { %v1141_v35 = vpop.eup %1140 }
 0x1ce   : > { %v313_v37 = vmul.f32 %v1141_v35, %v311_v32  ;;  %v1143_v39 = vpop.eup %1142  ;;  %vm318_vm4 = vweird.f32 %v1141_v35 }
 0x1cf   : > { %v350_v41 = vmul.f32 %v1143_v39, %v348_v34  ;;  %vm319_vm6 = vmor %vm317_vm5, %vm318_vm4  ;;  %vm355_vm9 = vweird.f32 %v1143_v39 }
 0x1d0   : > { %v314_v38 = vsub.f32 1.0, %v313_v37  ;;  %vm356_vm10 = vmor %vm354_vm8, %vm355_vm9 }
 0x1d1   : > { %v351_v43 = vsub.f32 1.0, %v350_v41 }
 0x1d2   : > { %v315_v40 = vmul.f32 %v1141_v35, %v314_v38 }
 0x1d3   : > { %v352_v47 = vmul.f32 %v1143_v39, %v351_v43 }
 0x1d4   : > { %v316_v42 = vadd.f32 %v1141_v35, %v315_v40 }
 0x1d5   : > { %v353_v53 = vadd.f32 %v1143_v39, %v352_v47 }
 0x1d6   : > { %v320_v46 = vsel %vm319_vm6, %v1141_v35, %v316_v42 }
 0x1d7   : > { %v325_v50 = vsel %vm322_vm7, %v324_v48, %v320_v46  ;;  %v357_v56 = vsel %vm356_vm10, %v1143_v39, %v353_v53 }
 0x1d8   : > { %v362_v58 = vsel %vm359_vm11, %v361_v55, %v357_v56  ;;  %v328_v62 = vmul.f32 %v1207_v9, %v325_v50 }
 0x1d9   : > { %v365_v2 = vmul.f32 %v1199_v7, %v362_v58 }
 0x22e   : > { %v331_v49 = vpop.permute.xlu1 %330 }
 0x22f   : > { %v333_v52 = vmul.f32 %v331_v49, %v325_v50 }
 0x231   : > { %335 = vrot.lane.b32.xlu2 %v333_v52, %s1221_s29 }
 0x236   : > { %v368_v57 = vpop.permute.xlu1 %367 }
 0x237   : > { %v370_v59 = vmul.f32 %v368_v57, %v362_v58 }
 0x239   : > { %372 = vrot.lane.b32.xlu2 %v370_v59, %s1221_s29 }
 0x241   : > { %388 = vperm.xlu2 %1130, %v386_v61  }
 0x28b   : > { %v336_v63 = vpop.permute.xlu2 %335 }
 0x28c   : > { %v338_v1 = vadd.f32 %v336_v63, %v328_v62 }
 0x28e   : > { %1144 = vtanh.f32 %v338_v1 }
 0x293   : > { %v373_v3 = vpop.permute.xlu2 %372 }
 0x294   : > { %v1145_v4 = vpop.eup %1144  ;;  %v375_v5 = vadd.f32 %v373_v3, %v365_v2 }
 0x295   : > { %341 = vrot.lane.b32.xlu0 %v1145_v4, %s1222_s30 }
 0x296   : > { %1146 = vtanh.f32 %v375_v5 }
 0x29b   : > { %v389_v12 = vpop.permute.xlu2 %388 }
 0x29c   : > { %v1147_v13 = vpop.eup %1146  ;;  %vm390_vm14 = vcmp.eq.s32.totalorder %v389_v12, 1 }
 0x29d   : > { %v413_v9 = vsel %vm390_vm14, %v338_v1, %v1207_v9   ;;  %401 = vperm.xlu0 %1131, %v399_v11   ;;  %378 = vrot.lane.b32.xlu1 %v1147_v13, %s1222_s30 }
 0x307   : > { %v342_v14 = vpop.permute.xlu0 %341 }
 0x308   : > { %v344_v15 = vmul.f32 %v342_v14, %v325_v50 }
 0x30a   : > { %v412_v10 = vsel %vm390_vm14, %v344_v15, %v1211_v10   ;;  %v391_v16 = vsel %vm390_vm14, %v344_v15, 0.0 }
 0x30b   : > { %393 = vrot.lane.b32.xlu1 %v391_v16, %s1218_s4 }
 0x30f   : > { %v402_v17 = vpop.permute.xlu0 %401  ;;  %v379_v18 = vpop.permute.xlu1 %378 }
 0x310   : > { %vm403_vm15 = vcmp.eq.s32.totalorder %v402_v17, 1  ;;  %v381_v19 = vmul.f32 %v379_v18, %v362_v58 }
 0x311   : > { %v415_v7 = vsel %vm403_vm15, %v375_v5, %v1199_v7  }
 0x312   : > { %v414_v8 = vsel %vm403_vm15, %v381_v19, %v1203_v8   ;;  %v404_v20 = vsel %vm403_vm15, %v381_v19, 0.0 }
 0x313   : > { %406 = vrot.lane.b32.xlu2 %v404_v20, %s1218_s4 }
 0x36d   : > { %v407_v21 = vpop.permute.xlu2 %406 }
 0x36e   : > { %411 = vst.msk [vmem:[%s410_s13] sm:$0xff] %vm260_vm3, %v407_v21 }
 0x37a   :  { %233 = sbr.rel (!%p230_p3) target bundleno = 192 (0xc0), region = 98 }
 0x37d   : > { %v394_v22 = vpop.permute.xlu1 %393 }
 0x37e   : > { %398 = vst.msk [vmem:[%s397_s15] sm:$0xff] %vm260_vm3, %v394_v22 }
 0x37f PF:  { %vm430_vm0 = vcmask 130048   ;;  %v1473_v31 = vld [vmem:[#allocation5] sm:$0xff]  ;;  %v1223_v33 = vmov 0   ;;  %v1485_v38 = vld [vmem:[#allocation5 + $0x18] sm:$0xff]  ;;  %v1487_v39 = vld [vmem:[#allocation5 + $0x10] sm:$0xff]  ;;  %vm817_vm1 = vcmp.gt.s32.totalorder %v1289_v0, 0 }
 0x380   :  { %1148 = vset.pattern.permute.xlu1 %v1223_v33  ;;  %1149 = vset.pattern.permute.xlu0 %v1223_v33  ;;  %v513_v35 = vsel %vm430_vm0, %v1473_v31, 0.0  ;;  %v1489_v40 = vld [vmem:[#allocation5 + $0x8] sm:$0xff]  ;;  %v522_v41 = vsel %vm430_vm0, %v1485_v38, 0.0  ;;  %v519_v42 = vsel %vm430_vm0, %v1487_v39, 0.0  ;;  %v1497_v44 = vld [vmem:[#allocation5 + $0x30] sm:$0xff]  ;;  %v1501_v46 = vld [vmem:[#allocation5 + $0x20] sm:$0xff] }
 0x381   :  { %1150 = vset.pattern.permute.xlu2 %v1223_v33  ;;  %v516_v43 = vsel %vm430_vm0, %v1489_v40, 0.0  ;;  %v1499_v45 = vld [vmem:[#allocation5 + $0x28] sm:$0xff]  ;;  %v531_v47 = vsel %vm430_vm0, %v1497_v44, 0.0  ;;  %v525_v49 = vsel %vm430_vm0, %v1501_v46, 0.0  ;;  %v1509_v50 = vld [vmem:[#allocation5 + $0x38] sm:$0xff]  ;;  %v825_v52 = vsel %vm817_vm1, 1, %v1223_v33 }
 0x382   :  { %v528_v48 = vsel %vm430_vm0, %v1499_v45, 0.0  ;;  %v534_v51 = vsel %vm430_vm0, %v1509_v50, 0.0  ;;  %vm818_vm2 = vcmp.gt.s32.totalorder %v1289_v0, 1  ;;  %vm820_vm3 = vcmp.gt.s32.totalorder %v1289_v0, 3  ;;  %v1063_v19 = vld [vmem:[%s1908_s7] sm:$0xff] }
 0x383   :  { %v826_v53 = vsel %vm818_vm2, 1, %v1223_v33  ;;  %v828_v54 = vsel %vm820_vm3, 1, %v1223_v33  ;;  %vm823_vm4 = vcmp.gt.s32.totalorder %v1289_v0, 6  ;;  %vm822_vm5 = vcmp.gt.s32.totalorder %v1289_v0, 5  ;;  %v1533_v20 = vld [vmem:[%s1905_s3] sm:$0xff]  ;;  %441 = vmatpush.bf16.msra.mxu0 %v1063_v19  ;;  %s1224_s3 = smov 32  }
 0x384   :  { %v831_v55 = vsel %vm823_vm4, 1, %v1223_v33  ;;  %v830_v56 = vsel %vm822_vm5, 1, %v1223_v33  ;;  %vm819_vm6 = vcmp.gt.s32.totalorder %v1289_v0, 2  ;;  %vm821_vm7 = vcmp.gt.s32.totalorder %v1289_v0, 4 }
 0x385   :  { %v1449_v23 = vld [vmem:[#allocation4 + $0x20] sm:$0xff]  ;;  %v1451_v24 = vld [vmem:[#allocation4 + $0x10] sm:$0xff]  ;;  %v1461_v7 = vld [vmem:[#allocation4 + $0x28] sm:$0xff]  ;;  %v827_v57 = vsel %vm819_vm6, 1, %v1223_v33  ;;  %v829_v58 = vsel %vm821_vm7, 1, %v1223_v33  ;;  %vm824_vm8 = vcmp.gt.s32.totalorder %v1289_v0, 7 }
 0x386   :  { %v1453_v25 = vld [vmem:[#allocation4] sm:$0xff]  ;;  %v501_v26 = vsel %vm430_vm0, %v1449_v23, 0.0  ;;  %v495_v27 = vsel %vm430_vm0, %v1451_v24, 0.0  ;;  %v1463_v8 = vld [vmem:[#allocation4 + $0x18] sm:$0xff]  ;;  %v1465_v9 = vld [vmem:[#allocation4 + $0x8] sm:$0xff]  ;;  %v504_v28 = vsel %vm430_vm0, %v1461_v7, 0.0 }
 0x387   :  { %v489_v10 = vsel %vm430_vm0, %v1453_v25, 0.0  ;;  %502 = vadd.xlane.f32.xlu2 %v501_v26  ;;  %496 = vadd.xlane.f32.xlu1 %v495_v27  ;;  %v498_v29 = vsel %vm430_vm0, %v1463_v8, 0.0  ;;  %v492_v30 = vsel %vm430_vm0, %v1465_v9, 0.0  ;;  %v1475_v32 = vld [vmem:[#allocation4 + $0x38] sm:$0xff]  ;;  %v1477_v34 = vld [vmem:[#allocation4 + $0x30] sm:$0xff]  ;;  %v832_v62 = vsel %vm824_vm8, 1, %v1223_v33 }
 0x388   :  { %490 = vadd.xlane.f32.xlu0 %v489_v10  ;;  %v510_v36 = vsel %vm430_vm0, %v1475_v32, 0.0  ;;  %v507_v37 = vsel %vm430_vm0, %v1477_v34, 0.0  ;;  %v1064_v26 = vld [vmem:[%s1909_s8] sm:$0xff] }
 0x389   :  { %466 = vmatpush.bf16.msra.mxu1 %v1064_v26 }
 0x38f   :  { %505 = vadd.xlane.f32.xlu2 %v504_v28  ;;  %499 = vadd.xlane.f32.xlu1 %v498_v29 }
 0x390   :  { %493 = vadd.xlane.f32.xlu0 %v492_v30 }
 0x397   :  { %514 = vadd.xlane.f32.xlu2 %v513_v35  ;;  %511 = vadd.xlane.f32.xlu1 %v510_v36 }
 0x398   :  { %508 = vadd.xlane.f32.xlu0 %v507_v37 }
 0x39f   :  { %523 = vadd.xlane.f32.xlu2 %v522_v41  ;;  %520 = vadd.xlane.f32.xlu1 %v519_v42 }
 0x3a0   :  { %517 = vadd.xlane.f32.xlu0 %v516_v43 }
 0x3a7   :  { %532 = vadd.xlane.f32.xlu2 %v531_v47  ;;  %529 = vadd.xlane.f32.xlu1 %v528_v48 }
 0x3a8   :  { %526 = vadd.xlane.f32.xlu0 %v525_v49 }
 0x3b0   :  { %535 = vadd.xlane.f32.xlu0 %v534_v51 }
 0x3bf   :  { %840 = vperm.xlu2 %1150, %v827_v57  }
 0x3c0   :  { %834 = vperm.xlu1 %1148, %v825_v52  }
 0x3c4   :  { %837 = vperm.xlu0 %1149, %v826_v53  }
 0x3c7   :  { %846 = vperm.xlu2 %1150, %v829_v58  }
 0x3c8   :  { %843 = vperm.xlu1 %1148, %v828_v54  }
 0x3cc   :  { %852 = vperm.xlu0 %1149, %v831_v55  }
 0x3cf   :  { %855 = vperm.xlu2 %1150, %v832_v62  }
 0x3d0   :  { %849 = vperm.xlu1 %1148, %v830_v56  }
 0x3fa   :  { %v503_v59 = vpop.xlane.xlu2 %502  ;;  %v497_v60 = vpop.xlane.xlu1 %496 }
 0x3fb   :  { %v491_v61 = vpop.xlane.xlu0 %490 }
 0x402   :  { %v506_v63 = vpop.xlane.xlu2 %505  ;;  %v500_v1 = vpop.xlane.xlu1 %499 }
 0x403   :  { %v494_v2 = vpop.xlane.xlu0 %493 }
 0x40a   :  { %v515_v3 = vpop.xlane.xlu2 %514  ;;  %v512_v4 = vpop.xlane.xlu1 %511 }
 0x40b   :  { %v537_v5 = vadd.f32 %v515_v3, %v491_v61  ;;  %v509_v6 = vpop.xlane.xlu0 %508 }
 0x40d   :  { %v545_v11 = vmul.f32 0.03125, %v537_v5 }
 0x40f   :  { %v1522_v12 = vsub.f32 %v1453_v25, %v545_v11  ;;  %v417_v25 = vpack.c.bf16 %v1533_v20, %v1533_v20  ;;  %v1567_v51 = vsub.f32 %v1473_v31, %v545_v11 }
 0x411   :  { %v569_v13 = vmul.f32 %v1522_v12, %v1522_v12  ;;  %1049 = vmatmul.msk.bf16.vlgmr.msra.gmra.mxu0 %vm430_vm0, %v417_v25  ;;  %1054 = vmatmul.msk.bf16.vlgmr.msra.gmra.mxu1 %vm430_vm0, %v417_v25  ;;  %v601_v31 = vmul.f32 %v1567_v51, %v1567_v51 }
 0x412   :  { %v524_v14 = vpop.xlane.xlu2 %523  ;;  %v521_v15 = vpop.xlane.xlu1 %520 }
 0x413   :  { %v540_v16 = vadd.f32 %v524_v14, %v500_v1  ;;  %v539_v0 = vadd.f32 %v521_v15, %v497_v60  ;;  %v577_v17 = vsel %vm430_vm0, %v569_v13, 0.0  ;;  %v518_v18 = vpop.xlane.xlu0 %517 }
 0x414   :  { %578 = vadd.xlane.f32.xlu1 %v577_v17  ;;  %v538_v28 = vadd.f32 %v518_v18, %v494_v2 }
 0x415   :  { %v548_v21 = vmul.f32 0.03125, %v540_v16  ;;  %v1535_v22 = vmul.f32 0.03125, %v539_v0 }
 0x416   :  { %v546_v41 = vmul.f32 0.03125, %v538_v28 }
 0x417   :  { %v1543_v27 = vsub.f32 %v1463_v8, %v548_v21  ;;  %v1547_v10 = vsub.f32 %v1451_v24, %v1535_v22  ;;  %v1588_v61 = vsub.f32 %v1485_v38, %v548_v21 }
 0x418   :  { %v1570_v52 = vsub.f32 %v1489_v40, %v546_v41  ;;  %v1625_v0 = vsub.f32 %v1465_v9, %v546_v41 }
 0x419   :  { %v571_v29 = vmul.f32 %v1547_v10, %v1547_v10  ;;  %v572_v30 = vmul.f32 %v1543_v27, %v1543_v27  ;;  %v604_v2 = vmul.f32 %v1588_v61, %v1588_v61 }
 0x41a   :  { %v533_v33 = vpop.xlane.xlu2 %532  ;;  %v530_v35 = vpop.xlane.xlu1 %529  ;;  %v602_v40 = vmul.f32 %v1570_v52, %v1570_v52  ;;  %v570_v19 = vmul.f32 %v1625_v0, %v1625_v0 }
 0x41b   :  { %v543_v8 = vadd.f32 %v533_v33, %v509_v6  ;;  %v542_v36 = vadd.f32 %v530_v35, %v506_v63  ;;  %v583_v37 = vsel %vm430_vm0, %v571_v29, 0.0  ;;  %v586_v24 = vsel %vm430_vm0, %v572_v30, 0.0  ;;  %v527_v47 = vpop.xlane.xlu0 %526 }
 0x41c   :  { %584 = vadd.xlane.f32.xlu0 %v583_v37  ;;  %587 = vadd.xlane.f32.xlu1 %v586_v24  ;;  %v541_v53 = vadd.f32 %v527_v47, %v503_v59  ;;  %v609_v59 = vsel %vm430_vm0, %v601_v31, 0.0  ;;  %v612_v60 = vsel %vm430_vm0, %v602_v40, 0.0  ;;  %v580_v25 = vsel %vm430_vm0, %v570_v19, 0.0 }
 0x41d   :  { %v551_v42 = vmul.f32 0.03125, %v543_v8  ;;  %v1557_v43 = vmul.f32 0.03125, %v542_v36 }
 0x41f   :  { %v1560_v48 = vsub.f32 %v1477_v34, %v551_v42  ;;  %v1564_v49 = vsub.f32 %v1461_v7, %v1557_v43  ;;  %v549_v7 = vmul.f32 0.03125, %v541_v53 }
 0x421   :  { %v574_v54 = vmul.f32 %v1564_v49, %v1564_v49  ;;  %v575_v55 = vmul.f32 %v1560_v48, %v1560_v48  ;;  %v1583_v58 = vsub.f32 %v1501_v46, %v549_v7  ;;  %v1595_v46 = vsub.f32 %v1497_v44, %v551_v42 }
 0x422   :  { %v1615_v14 = vpop.permute.xlu2 %840  ;;  %v1641_v21 = vsub.f32 %v1449_v23, %v549_v7  ;;  %v1655_v23 = vsub.f32 %v1487_v39, %v1535_v22 }
 0x423   :  { %v592_v34 = vsel %vm430_vm0, %v574_v54, 0.0  ;;  %v595_v56 = vsel %vm430_vm0, %v575_v55, 0.0  ;;  %v536_v57 = vpop.xlane.xlu0 %535  ;;  %v605_v63 = vmul.f32 %v1583_v58, %v1583_v58  ;;  %v607_v44 = vmul.f32 %v1595_v46, %v1595_v46 }
 0x424   :  { %593 = vadd.xlane.f32.xlu0 %v592_v34  ;;  %596 = vadd.xlane.f32.xlu1 %v595_v56  ;;  %v544_v62 = vadd.f32 %v536_v57, %v512_v4  ;;  %v618_v4 = vsel %vm430_vm0, %v604_v2, 0.0  ;;  %vm859_vm11 = vcmp.eq.s32.totalorder %v1615_v14, 1  ;;  %v573_v26 = vmul.f32 %v1641_v21, %v1641_v21  ;;  %v1151_v2 = vld [vmem:[%s1910_s9] ss:$0 sm:$0xff]  ;;  %s1225_s9 = smov 16  }
 0x425   :  { %v621_v3 = vsel %vm430_vm0, %v605_v63, 0.0  ;;  %v627_v11 = vsel %vm430_vm0, %v607_v44, 0.0  ;;  %v900_v18 = vsel %vm859_vm11, %v1533_v20, 0.0  ;;  %v603_v35 = vmul.f32 %v1655_v23, %v1655_v23 }
 0x426   :  { %v552_v1 = vmul.f32 0.03125, %v544_v62  ;;  %v589_v29 = vsel %vm430_vm0, %v573_v26, 0.0 }
 0x427   :  { %v615_v8 = vsel %vm430_vm0, %v603_v35, 0.0 }
 0x428   :  { %v1601_v38 = vsub.f32 %v1509_v50, %v552_v1  ;;  %v1648_v28 = vsub.f32 %v1475_v32, %v552_v1  ;;  %v1662_v32 = vsub.f32 %v1499_v45, %v1557_v43 }
 0x42a   :  { %v608_v50 = vmul.f32 %v1601_v38, %v1601_v38  ;;  %v1628_v17 = vpop.permute.xlu2 %846  ;;  %v576_v30 = vmul.f32 %v1648_v28, %v1648_v28  ;;  %v606_v36 = vmul.f32 %v1662_v32, %v1662_v32 }
 0x42b   :  { %vm861_vm12 = vcmp.eq.s32.totalorder %v1628_v17, 1 }
 0x42c   :  { %610 = vadd.xlane.f32.xlu0 %v609_v59  ;;  %613 = vadd.xlane.f32.xlu1 %v612_v60  ;;  %v630_v13 = vsel %vm430_vm0, %v608_v50, 0.0  ;;  %v902_v9 = vsel %vm861_vm12, %v1533_v20, 0.0  ;;  %v598_v33 = vsel %vm430_vm0, %v576_v30, 0.0  ;;  %v624_v37 = vsel %vm430_vm0, %v606_v36, 0.0 }
 0x432   :  { %v1598_v5 = vpop.permute.xlu1 %834 }
 0x433   :  { %vm857_vm9 = vcmp.eq.s32.totalorder %v1598_v5, 1 }
 0x434   :  { %619 = vadd.xlane.f32.xlu0 %v618_v4  ;;  %622 = vadd.xlane.f32.xlu1 %v621_v3  ;;  %v898_v6 = vsel %vm857_vm9, %v1533_v20, 0.0 }
 0x435   :  { %914 = vrot.lane.b32.xlu2 %v898_v6, %s1224_s3 }
 0x436   :  { %v1617_v15 = vpop.permute.xlu0 %837 }
 0x437   :  { %vm858_vm10 = vcmp.eq.s32.totalorder %v1617_v15, 1 }
 0x438   :  { %v899_v16 = vsel %vm858_vm10, %v1533_v20, 0.0 }
 0x43a   :  { %v1670_v22 = vpop.permute.xlu1 %843 }
 0x43b   :  { %vm860_vm13 = vcmp.eq.s32.totalorder %v1670_v22, 1 }
 0x43c   :  { %628 = vadd.xlane.f32.xlu0 %v627_v11  ;;  %631 = vadd.xlane.f32.xlu1 %v630_v13  ;;  %v901_v45 = vsel %vm860_vm13, %v1533_v20, 0.0 }
 0x43e   :  { %v1668_v39 = vpop.permute.xlu0 %852 }
 0x43f   :  { %vm863_vm8 = vcmp.eq.s32.totalorder %v1668_v39, 1 }
 0x442   :  { %v1675_v41 = vpop.permute.xlu1 %849 }
 0x450   :  { %918 = vrot.lane.b32.xlu0 %v900_v18, %s1224_s3 }
 0x455   :  { %916 = vrot.lane.b32.xlu1 %v899_v16, %s1224_s3 }
 0x45d   :  { %922 = vrot.lane.b32.xlu1 %v902_v9, %s1224_s3  ;;  %v1152_v9 = vld [vmem:[%s1911_s10] ss:$0 sm:$0xff] }
 0x45e   :  { %581 = vadd.xlane.f32.xlu2 %v580_v25 }
 0x466   :  { %590 = vadd.xlane.f32.xlu2 %v589_v29 }
 0x46e   :  { %599 = vadd.xlane.f32.xlu2 %v598_v33 }
 0x476   :  { %616 = vadd.xlane.f32.xlu2 %v615_v8 }
 0x47e   :  { %625 = vadd.xlane.f32.xlu2 %v624_v37 }
 0x487   :  { %v579_v53 = vpop.xlane.xlu1 %578 }
 0x48e   :  { %v443_v42 = vpop.f32.mrf.mxu0  ;;  %v468_v47 = vpop.f32.mrf.mxu1 }
 0x48f   :  { %v1672_v24 = vpop.xlane.xlu0 %584  ;;  %v588_v40 = vpop.xlane.xlu1 %587  ;;  %v444_v13 = vadd.f32 %v1151_v2, %v443_v42  ;;  %v1691_v35 = vadd.f32 %v1152_v9, %v468_v47 }
 0x491   :  { %v1689_v29 = vadd.f32 1.0, %v444_v13 }
 0x496   :  { %920 = vrot.lane.b32.xlu2 %v901_v45, %s1224_s3  ;;  %v445_v54 = vpop.f32.mrf.mxu0  ;;  %v470_v7 = vpop.f32.mrf.mxu1 }
 0x497   :  { %v1681_v43 = vpop.xlane.xlu0 %593  ;;  %v597_v3 = vpop.xlane.xlu1 %596 }
 0x49f   :  { %v611_v55 = vpop.xlane.xlu0 %610 }
 0x4a0   :  { %v633_v34 = vadd.f32 %v611_v55, %v579_v53 }
 0x4a2   :  { %v641_v56 = vmul.f32 0.03125, %v633_v34 }
 0x4a4   :  { %v649_v31 = vadd.f32 1e-05, %v641_v56 }
 0x4a6   :  { %1153 = vrsqrt.f32 %v649_v31  ;;  %vm663_vm14 = vweird.f32 %v649_v31 }
 0x4a7   :  { %v620_v57 = vpop.xlane.xlu0 %619 }
 0x4a8   :  { %v636_v59 = vadd.f32 %v620_v57, %v588_v40 }
 0x4aa   :  { %v644_v60 = vmul.f32 0.03125, %v636_v59 }
 0x4ac   :  { %v1154_v62 = vpop.eup %1153  ;;  %v652_v63 = vadd.f32 1e-05, %v644_v60 }
 0x4ad   :  { %v658_v1 = vmul.f32 %v1154_v62, %v649_v31  ;;  %vm664_vm15 = vweird.f32 %v1154_v62  ;;  %v1706_v31 = vpop.permute.xlu2 %855 }
 0x4ae   :  { %1155 = vrsqrt.f32 %v652_v63  ;;  %vm665_vm1 = vmor %vm663_vm14, %vm664_vm15  ;;  %vm693_vm3 = vweird.f32 %v652_v63 }
 0x4af   :  { %v659_v4 = vmul.f32 %v1154_v62, %v658_v1  ;;  %v629_v6 = vpop.xlane.xlu0 %628 }
 0x4b0   :  { %v639_v44 = vadd.f32 %v629_v6, %v597_v3 }
 0x4b1   :  { %v660_v50 = vmul.f32 0.5, %v659_v4  ;;  %v614_v4 = vpop.xlane.xlu1 %613 }
 0x4b2   :  { %v647_v11 = vmul.f32 0.03125, %v639_v44 }
 0x4b3   :  { %v661_v16 = vsub.f32 1.5, %v660_v50 }
 0x4b4   :  { %v1156_v18 = vpop.eup %1155  ;;  %v655_v19 = vadd.f32 1e-05, %v647_v11 }
 0x4b5   :  { %v688_v25 = vmul.f32 %v1156_v18, %v652_v63  ;;  %v662_v26 = vmul.f32 %v1154_v62, %v661_v16  ;;  %vm694_vm2 = vweird.f32 %v1156_v18  ;;  %v1721_v1 = vpop.permute.xlu2 %914 }
 0x4b6   :  { %1157 = vrsqrt.f32 %v655_v19  ;;  %vm695_vm4 = vmor %vm693_vm3, %vm694_vm2  ;;  %vm723_vm5 = vweird.f32 %v655_v19 }
 0x4b7   :  { %v689_v30 = vmul.f32 %v1156_v18, %v688_v25  ;;  %v666_v33 = vsel %vm665_vm1, %v1154_v62, %v662_v26 }
 0x4b8   :  { %v737_v8 = vmul.f32 %v666_v33, %v1522_v12  ;;  %v761_v36 = vmul.f32 %v666_v33, %v1567_v51 }
 0x4b9   :  { %v690_v37 = vmul.f32 0.5, %v689_v30  ;;  %v623_v13 = vpop.xlane.xlu1 %622 }
 0x4ba   :  { %777 = vrot.lane.b32.xlu2 %v761_v36, %s1225_s9  ;;  %v745_v45 = vmul.f32 %v737_v8, %v1689_v29 }
 0x4bb   :  { %v691_v42 = vsub.f32 1.5, %v690_v37 }
 0x4bc   :  { %v1158_v53 = vpop.eup %1157  ;;  %v753_v54 = vadd.f32 %v745_v45, %v1691_v35 }
 0x4bd   :  { %v718_v55 = vmul.f32 %v1158_v53, %v655_v19  ;;  %v692_v34 = vmul.f32 %v1156_v18, %v691_v42  ;;  %vm724_vm6 = vweird.f32 %v1158_v53 }
 0x4be   :  { %v865_v12 = vsel %vm857_vm9, %v753_v54, 0.0  ;;  %vm725_vm7 = vmor %vm723_vm5, %vm724_vm6 }
 0x4bf   :  { %v719_v47 = vmul.f32 %v1158_v53, %v718_v55  ;;  %v696_v51 = vsel %vm695_vm4, %v1156_v18, %v692_v34  ;;  %873 = vst.msk [vmem:[%s1912_s11] sm:$0xff] %vm430_vm0, %v865_v12 }
 0x4c0   :  { %v740_v56 = vmul.f32 %v696_v51, %v1543_v27  ;;  %v764_v7 = vmul.f32 %v696_v51, %v1588_v61 }
 0x4c1   :  { %v720_v40 = vmul.f32 0.5, %v719_v47  ;;  %v632_v30 = vpop.xlane.xlu1 %631 }
 0x4c2   :  { %783 = vrot.lane.b32.xlu2 %v764_v7, %s1225_s9  ;;  %v748_v57 = vmul.f32 %v740_v56, %v1689_v29 }
 0x4c3   :  { %v721_v59 = vsub.f32 1.5, %v720_v40 }
 0x4c4   :  { %v756_v60 = vadd.f32 %v748_v57, %v1691_v35 }
 0x4c5   :  { %v722_v62 = vmul.f32 %v1158_v53, %v721_v59 }
 0x4c6   :  { %v868_v63 = vsel %vm860_vm13, %v756_v60, 0.0 }
 0x4c7   :  { %v1713_v27 = vsel %vm725_vm7, %v1158_v53, %v722_v62  ;;  %876 = vst.msk [vmem:[%s1912_s11 + $0x18] sm:$0xff] %vm430_vm0, %v868_v63 }
 0x4c8   :  { %v743_v61 = vmul.f32 %v1713_v27, %v1560_v48 }
 0x4ca   :  { %v751_v2 = vmul.f32 %v743_v61, %v1689_v29 }
 0x4cc   :  { %v759_v3 = vadd.f32 %v751_v2, %v1691_v35 }
 0x4ce   :  { %v871_v6 = vsel %vm863_vm8, %v759_v3, 0.0 }
 0x4cf   :  { %879 = vst.msk [vmem:[%s1912_s11 + $0x30] sm:$0xff] %vm430_vm0, %v871_v6 }
 0x4d1   :  { %v582_v44 = vpop.xlane.xlu2 %581 }
 0x4d2   :  { %v634_v50 = vadd.f32 %v614_v4, %v582_v44 }
 0x4d4   :  { %v642_v48 = vmul.f32 0.03125, %v634_v50 }
 0x4d6   :  { %v650_v11 = vadd.f32 1e-05, %v642_v48 }
 0x4d8   :  { %1159 = vrsqrt.f32 %v650_v11  ;;  %vm673_vm15 = vweird.f32 %v650_v11 }
 0x4d9   :  { %v591_v16 = vpop.xlane.xlu2 %590 }
 0x4da   :  { %v637_v18 = vadd.f32 %v623_v13, %v591_v16 }
 0x4dc   :  { %v645_v19 = vmul.f32 0.03125, %v637_v18 }
 0x4de   :  { %v1160_v9 = vpop.eup %1159  ;;  %v653_v25 = vadd.f32 1e-05, %v645_v19 }
 0x4df   :  { %v668_v26 = vmul.f32 %v1160_v9, %v650_v11  ;;  %vm674_vm14 = vweird.f32 %v1160_v9 }
 0x4e0   :  { %1161 = vrsqrt.f32 %v653_v25  ;;  %vm675_vm1 = vmor %vm673_vm15, %vm674_vm14  ;;  %vm703_vm3 = vweird.f32 %v653_v25  ;;  %vm864_vm15 = vcmp.eq.s32.totalorder %v1706_v31, 1 }
 0x4e1   :  { %v669_v33 = vmul.f32 %v1160_v9, %v668_v26  ;;  %v600_v8 = vpop.xlane.xlu2 %599 }
 0x4e2   :  { %v640_v36 = vadd.f32 %v632_v30, %v600_v8 }
 0x4e3   :  { %v670_v37 = vmul.f32 0.5, %v669_v33 }
 0x4e4   :  { %v648_v45 = vmul.f32 0.03125, %v640_v36 }
 0x4e5   :  { %v671_v42 = vsub.f32 1.5, %v670_v37 }
 0x4e6   :  { %v1162_v53 = vpop.eup %1161  ;;  %v656_v54 = vadd.f32 1e-05, %v648_v45 }
 0x4e7   :  { %v698_v55 = vmul.f32 %v1162_v53, %v653_v25  ;;  %v672_v34 = vmul.f32 %v1160_v9, %v671_v42  ;;  %vm704_vm2 = vweird.f32 %v1162_v53 }
 0x4e8   :  { %1163 = vrsqrt.f32 %v656_v54  ;;  %vm705_vm4 = vmor %vm703_vm3, %vm704_vm2  ;;  %vm733_vm6 = vweird.f32 %v656_v54  ;;  %vm862_vm2 = vcmp.eq.s32.totalorder %v1675_v41, 1 }
 0x4e9   :  { %v699_v12 = vmul.f32 %v1162_v53, %v698_v55  ;;  %v617_v47 = vpop.xlane.xlu2 %616  ;;  %v676_v51 = vsel %vm675_vm1, %v1160_v9, %v672_v34 }
 0x4ea   :  { %v635_v56 = vadd.f32 %v617_v47, %v1672_v24  ;;  %v762_v7 = vmul.f32 %v676_v51, %v1570_v52  ;;  %v738_v40 = vmul.f32 %v676_v51, %v1625_v0 }
 0x4eb   :  { %v700_v57 = vmul.f32 0.5, %v699_v12 }
 0x4ec   :  { %v643_v59 = vmul.f32 0.03125, %v635_v56  ;;  %779 = vrot.lane.b32.xlu0 %v762_v7, %s1225_s9  ;;  %v746_v60 = vmul.f32 %v738_v40, %v1689_v29  ;;  %v903_v56 = vsel %vm862_vm2, %v1533_v20, 0.0 }
 0x4ed   :  { %v701_v62 = vsub.f32 1.5, %v700_v57 }
 0x4ee   :  { %v1164_v63 = vpop.eup %1163  ;;  %v651_v61 = vadd.f32 1e-05, %v643_v59  ;;  %v754_v2 = vadd.f32 %v746_v60, %v1691_v35  ;;  %v767_v60 = vmul.f32 %v1713_v27, %v1595_v46  ;;  %v904_v46 = vsel %vm863_vm8, %v1533_v20, 0.0 }
 0x4ef   :  { %v728_v3 = vmul.f32 %v1164_v63, %v656_v54  ;;  %v702_v4 = vmul.f32 %v1162_v53, %v701_v62  ;;  %vm734_vm5 = vweird.f32 %v1164_v63 }
 0x4f0   :  { %1165 = vrsqrt.f32 %v651_v61  ;;  %v866_v52 = vsel %vm858_vm10, %v754_v2, 0.0  ;;  %vm735_vm7 = vmor %vm733_vm6, %vm734_vm5  ;;  %vm683_vm1 = vweird.f32 %v651_v61 }
 0x4f1   :  { %v729_v0 = vmul.f32 %v1164_v63, %v728_v3  ;;  %v626_v24 = vpop.xlane.xlu2 %625  ;;  %v706_v6 = vsel %vm705_vm4, %v1162_v53, %v702_v4  ;;  %874 = vst.msk [vmem:[%s1912_s11 + $0x8] sm:$0xff] %vm430_vm0, %v866_v52 }
 0x4f2   :  { %v638_v44 = vadd.f32 %v626_v24, %v1681_v43  ;;  %v765_v50 = vmul.f32 %v706_v6, %v1583_v58  ;;  %v741_v48 = vmul.f32 %v706_v6, %v1641_v21 }
 0x4f3   :  { %v730_v11 = vmul.f32 0.5, %v729_v0 }
 0x4f4   :  { %v646_v13 = vmul.f32 0.03125, %v638_v44  ;;  %785 = vrot.lane.b32.xlu0 %v765_v50, %s1225_s9  ;;  %v749_v16 = vmul.f32 %v741_v48, %v1689_v29  ;;  %v919_v44 = vpop.permute.xlu0 %918 }
 0x4f5   :  { %v731_v18 = vsub.f32 1.5, %v730_v11  ;;  %v917_v11 = vpop.permute.xlu1 %916 }
 0x4f6   :  { %v1166_v19 = vpop.eup %1165  ;;  %v654_v9 = vadd.f32 1e-05, %v646_v13  ;;  %v757_v25 = vadd.f32 %v749_v16, %v1691_v35 }
 0x4f7   :  { %v678_v26 = vmul.f32 %v1166_v19, %v651_v61  ;;  %v732_v30 = vmul.f32 %v1164_v63, %v731_v18  ;;  %vm684_vm14 = vweird.f32 %v1166_v19 }
 0x4f8   :  { %1167 = vrsqrt.f32 %v654_v9  ;;  %v869_v58 = vsel %vm861_vm12, %v757_v25, 0.0  ;;  %vm685_vm3 = vmor %vm683_vm1, %vm684_vm14  ;;  %vm713_vm5 = vweird.f32 %v654_v9  ;;  %vm938_vm14 = vcmask 392448  }
 0x4f9   :  { %v679_v21 = vmul.f32 %v1166_v19, %v678_v26  ;;  %v736_v43 = vsel %vm735_vm7, %v1164_v63, %v732_v30  ;;  %877 = vst.msk [vmem:[%s1912_s11 + $0x20] sm:$0xff] %vm430_vm0, %v869_v58  ;;  %v921_v61 = vpop.permute.xlu2 %920  ;;  %vm889_vm7 = vcmask 261248  }
 0x4fa   :  { %v768_v33 = vmul.f32 %v736_v43, %v1601_v38  ;;  %v744_v8 = vmul.f32 %v736_v43, %v1648_v28 }
 0x4fb   :  { %v680_v36 = vmul.f32 0.5, %v679_v21 }
 0x4fc   :  { %791 = vrot.lane.b32.xlu0 %v768_v33, %s1225_s9  ;;  %v752_v37 = vmul.f32 %v744_v8, %v1689_v29 }
 0x4fd   :  { %v681_v45 = vsub.f32 1.5, %v680_v36  ;;  %v923_v30 = vpop.permute.xlu1 %922 }
 0x4fe   :  { %v1168_v42 = vpop.eup %1167  ;;  %v760_v53 = vadd.f32 %v752_v37, %v1691_v35 }
 0x4ff   :  { %v708_v54 = vmul.f32 %v1168_v42, %v654_v9  ;;  %v682_v55 = vmul.f32 %v1166_v19, %v681_v45  ;;  %vm714_vm4 = vweird.f32 %v1168_v42 }
 0x500   :  { %v872_v38 = vsel %vm864_vm15, %v760_v53, 0.0  ;;  %vm715_vm6 = vmor %vm713_vm5, %vm714_vm4 }
 0x501   :  { %v709_v28 = vmul.f32 %v1168_v42, %v708_v54  ;;  %v686_v34 = vsel %vm685_vm3, %v1166_v19, %v682_v55  ;;  %880 = vst.msk [vmem:[%s1912_s11 + $0x38] sm:$0xff] %vm430_vm0, %v872_v38 }
 0x502   :  { %v763_v12 = vmul.f32 %v686_v34, %v1655_v23  ;;  %v739_v47 = vmul.f32 %v686_v34, %v1547_v10 }
 0x503   :  { %v710_v51 = vmul.f32 0.5, %v709_v28 }
 0x504   :  { %924 = vrot.lane.b32.xlu0 %v903_v56, %s1224_s3  ;;  %781 = vrot.lane.b32.xlu1 %v763_v12, %s1225_s9  ;;  %v747_v7 = vmul.f32 %v739_v47, %v1689_v29 }
 0x505   :  { %v711_v40 = vsub.f32 1.5, %v710_v51 }
 0x506   :  { %v755_v57 = vadd.f32 %v747_v7, %v1691_v35 }
 0x507   :  { %v712_v59 = vmul.f32 %v1168_v42, %v711_v40 }
 0x508   :  { %v867_v10 = vsel %vm859_vm11, %v755_v57, 0.0 }
 0x509   :  { %v716_v23 = vsel %vm715_vm6, %v1168_v42, %v712_v59  ;;  %875 = vst.msk [vmem:[%s1912_s11 + $0x10] sm:$0xff] %vm430_vm0, %v867_v10 }
 0x50a   :  { %v766_v62 = vmul.f32 %v716_v23, %v1662_v32  ;;  %v742_v63 = vmul.f32 %v716_v23, %v1564_v49  ;;  %v905_v49 = vsel %vm864_vm15, %v1533_v20, 0.0 }
 0x50c   :  { %789 = vrot.lane.b32.xlu1 %v767_v60, %s1225_s9  ;;  %787 = vrot.lane.b32.xlu2 %v766_v62, %s1225_s9  ;;  %v750_v2 = vmul.f32 %v742_v63, %v1689_v29 }
 0x50e   :  { %v758_v3 = vadd.f32 %v750_v2, %v1691_v35 }
 0x510   :  { %v870_v4 = vsel %vm862_vm2, %v758_v3, 0.0 }
 0x511   :  { %878 = vst.msk [vmem:[%s1912_s11 + $0x28] sm:$0xff] %vm430_vm0, %v870_v4 }
 0x514   :  { %928 = vrot.lane.b32.xlu1 %v905_v49, %s1224_s3  ;;  %926 = vrot.lane.b32.xlu2 %v904_v46, %s1224_s3  ;;  %v778_v32 = vpop.permute.xlu2 %777 }
 0x515   :  { %v801_v27 = vmul.f32 %v778_v32, %v1689_v29 }
 0x517   :  { %v809_v52 = vadd.f32 %v801_v27, %v1691_v35 }
 0x519   :  { %v881_v0 = vsel %vm857_vm9, %v809_v52, 0.0 }
 0x51a   :  { %890 = vst.msk [vmem:[%s1912_s11] sm:$0xff] %vm889_vm7, %v881_v0 }
 0x51b   :  { %939 = vst.msk [vmem:[%s1912_s11] sm:$0xff] %vm938_vm14, %v1721_v1 }
 0x51c   :  { %v784_v20 = vpop.permute.xlu2 %783 }
 0x51d   :  { %v804_v24 = vmul.f32 %v784_v20, %v1689_v29 }
 0x51f   :  { %v812_v6 = vadd.f32 %v804_v24, %v1691_v35 }
 0x521   :  { %v884_v5 = vsel %vm860_vm13, %v812_v6, 0.0 }
 0x522   :  { %893 = vst.msk [vmem:[%s1912_s11 + $0x18] sm:$0xff] %vm889_vm7, %v884_v5 }
 0x523   :  { %942 = vst.msk [vmem:[%s1912_s11 + $0x18] sm:$0xff] %vm938_vm14, %v921_v61 }
 0x55e   :  { %v780_v1 = vpop.permute.xlu0 %779 }
 0x55f   :  { %v802_v50 = vmul.f32 %v780_v1, %v1689_v29 }
 0x561   :  { %v810_v48 = vadd.f32 %v802_v50, %v1691_v35 }
 0x563   :  { %v882_v22 = vsel %vm858_vm10, %v810_v48, 0.0 }
 0x564   :  { %891 = vst.msk [vmem:[%s1912_s11 + $0x8] sm:$0xff] %vm889_vm7, %v882_v22 }
 0x565   :  { %940 = vst.msk [vmem:[%s1912_s11 + $0x8] sm:$0xff] %vm938_vm14, %v917_v11 }
 0x566   :  { %v786_v13 = vpop.permute.xlu0 %785  ;;  %v788_v16 = vpop.permute.xlu2 %787 }
 0x567   :  { %v805_v18 = vmul.f32 %v786_v13, %v1689_v29  ;;  %v806_v19 = vmul.f32 %v788_v16, %v1689_v29 }
 0x569   :  { %v813_v9 = vadd.f32 %v805_v18, %v1691_v35  ;;  %v814_v15 = vadd.f32 %v806_v19, %v1691_v35 }
 0x56b   :  { %v885_v25 = vsel %vm861_vm12, %v813_v9, 0.0  ;;  %v886_v26 = vsel %vm862_vm2, %v814_v15, 0.0 }
 0x56c   :  { %894 = vst.msk [vmem:[%s1912_s11 + $0x20] sm:$0xff] %vm889_vm7, %v885_v25 }
 0x56d   :  { %943 = vst.msk [vmem:[%s1912_s11 + $0x20] sm:$0xff] %vm938_vm14, %v923_v30 }
 0x56e   :  { %v792_v58 = vpop.permute.xlu0 %791  ;;  %895 = vst.msk [vmem:[%s1912_s11 + $0x28] sm:$0xff] %vm889_vm7, %v886_v26  ;;  %v927_v14 = vpop.permute.xlu2 %926 }
 0x56f   :  { %v808_v17 = vmul.f32 %v792_v58, %v1689_v29 }
 0x571   :  { %v816_v41 = vadd.f32 %v808_v17, %v1691_v35 }
 0x573   :  { %v888_v21 = vsel %vm864_vm15, %v816_v41, 0.0 }
 0x574   :  { %897 = vst.msk [vmem:[%s1912_s11 + $0x38] sm:$0xff] %vm889_vm7, %v888_v21 }
 0x576   :  { %v925_v43 = vpop.permute.xlu0 %924  ;;  %v782_v33 = vpop.permute.xlu1 %781 }
 0x577   :  { %944 = vst.msk [vmem:[%s1912_s11 + $0x28] sm:$0xff] %vm938_vm14, %v925_v43  ;;  %v803_v8 = vmul.f32 %v782_v33, %v1689_v29 }
 0x579   :  { %v811_v36 = vadd.f32 %v803_v8, %v1691_v35 }
 0x57b   :  { %v883_v31 = vsel %vm859_vm11, %v811_v36, 0.0 }
 0x57c   :  { %892 = vst.msk [vmem:[%s1912_s11 + $0x10] sm:$0xff] %vm889_vm7, %v883_v31 }
 0x57d   :  { %941 = vst.msk [vmem:[%s1912_s11 + $0x10] sm:$0xff] %vm938_vm14, %v919_v44 }
 0x57e   :  { %v790_v37 = vpop.permute.xlu1 %789 }
 0x57f   :  { %v807_v45 = vmul.f32 %v790_v37, %v1689_v29 }
 0x581   :  { %v815_v42 = vadd.f32 %v807_v45, %v1691_v35 }
 0x583   :  { %v887_v53 = vsel %vm863_vm8, %v815_v42, 0.0 }
 0x584   :  { %896 = vst.msk [vmem:[%s1912_s11 + $0x30] sm:$0xff] %vm889_vm7, %v887_v53 }
 0x585   :  { %945 = vst.msk [vmem:[%s1912_s11 + $0x30] sm:$0xff] %vm938_vm14, %v927_v14 }
 0x586   :  { %v929_v54 = vpop.permute.xlu1 %928 }
 0x587   :  { %946 = vst.msk [vmem:[%s1912_s11 + $0x38] sm:$0xff] %vm938_vm14, %v929_v54 }

</bundles_post_ra>
